<compile_context>
chip_gen: v7x
topology: tpu7x:2x2x1
jax: 0.10.0
libtpu: 0.0.40
codegen_flags: <defaults>
</compile_context>

<pallas_src>
import functools

import jax
import jax.numpy as jnp
from jax import lax
from jax.experimental import pallas as pl
from jax.experimental.pallas import tpu as pltpu

BN_EPS = 1e-5
LANE = 128
_VMEM_LIMIT = 32 * 1024 * 1024  # safe across v5e/v6e/v7x scoped-VMEM defaults


def _largest_divisor_leq(n, cap):
    cap = max(1, min(n, cap))
    for d in range(cap, 0, -1):
        if n % d == 0:
            return d
    return 1


def _conv_stats_kernel(x_ref, w_ref, y_ref, sum_ref, sq_ref,
                       *, th, w_out, cin, cpad):
    """Implicit-GEMM 3x3 conv for TH output rows + per-channel sum / sum-sq."""
    i = pl.program_id(1)

    # (TH+2, W+2, Cin) halo window sliced from the VMEM-resident padded image.
    xwin = x_ref[0, pl.ds(i * th, th + 2)]

    acc = jnp.zeros((th * w_out, cpad), jnp.float32)
    for kh in range(3):
        xh = xwin[kh:kh + th]                                  # (TH, W+2, Cin)
        for kw in range(3):
            patch = xh[:, kw:kw + w_out, :].reshape(th * w_out, cin)
            acc += jnp.dot(patch, w_ref[kh * 3 + kw],
                           preferred_element_type=jnp.float32)

    y_ref[...] = acc.reshape(1, th, w_out, cpad)

    @pl.when(i == 0)
    def _():
        sum_ref[...] = jnp.zeros_like(sum_ref)
        sq_ref[...] = jnp.zeros_like(sq_ref)

    sum_ref[...] += jnp.sum(acc, axis=0, keepdims=True)[None]
    sq_ref[...] += jnp.sum(acc * acc, axis=0, keepdims=True)[None]


def _bn_relu_kernel(y_ref, scale_ref, shift_ref, o_ref):
    y = y_ref[...] * scale_ref[...] + shift_ref[...]
    o_ref[...] = jnp.maximum(y, 0.0).astype(o_ref.dtype)


def conv_bn_relu(x_nchw, weight, gamma, beta):
    """x_nchw: (N, Cin, H, W); weight: (Cout, Cin, 3, 3); gamma/beta: (Cout,)."""
    N, Cin, H, W = x_nchw.shape
    Cout = weight.shape[0]
    cpad = ((Cout + LANE - 1) // LANE) * LANE

    # ---- layout glue (done once) ----
    x = jnp.transpose(x_nchw, (0, 2, 3, 1)).astype(jnp.bfloat16)     # NHWC bf16
    xp = jnp.pad(x, ((0, 0), (1, 1), (1, 1), (0, 0)))                # (N,H+2,W+2,Cin)
    wmat = jnp.transpose(weight, (2, 3, 1, 0)).reshape(9, Cin, Cout)
    wmat = jnp.pad(wmat, ((0, 0), (0, 0), (0, cpad - Cout))).astype(jnp.bfloat16)
    gamma_p = jnp.pad(gamma.astype(jnp.float32), (0, cpad - Cout),
                      constant_values=1.0)
    beta_p = jnp.pad(beta.astype(jnp.float32), (0, cpad - Cout))

    # Output rows per pass-1 grid step (aim for ~512 matmul rows per tile).
    th = _largest_divisor_leq(H, max(1, 512 // W))
    n_h = H // th

    kernel1 = functools.partial(_conv_stats_kernel,
                                th=th, w_out=W, cin=Cin, cpad=cpad)
    y, ch_sum, ch_sq = pl.pallas_call(
        kernel1,
        grid=(N, n_h),
        in_specs=[
            pl.BlockSpec((1, H + 2, W + 2, Cin), lambda n, i: (n, 0, 0, 0)),
            pl.BlockSpec((9, Cin, cpad), lambda n, i: (0, 0, 0)),
        ],
        out_specs=(
            pl.BlockSpec((1, th, W, cpad), lambda n, i: (n, i, 0, 0)),
            pl.BlockSpec((1, 1, cpad), lambda n, i: (n, 0, 0)),
            pl.BlockSpec((1, 1, cpad), lambda n, i: (n, 0, 0)),
        ),
        out_shape=(
            jax.ShapeDtypeStruct((N, H, W, cpad), jnp.float32),
            jax.ShapeDtypeStruct((N, 1, cpad), jnp.float32),
            jax.ShapeDtypeStruct((N, 1, cpad), jnp.float32),
        ),
        compiler_params=pltpu.CompilerParams(
            dimension_semantics=("parallel", "arbitrary"),
            vmem_limit_bytes=_VMEM_LIMIT),
    )(xp, wmat)

    # ---- finalize global batch statistics (tiny, plain JAX) ----
    m_total = N * H * W
    s = jnp.sum(ch_sum[:, 0, :], axis=0)
    sq = jnp.sum(ch_sq[:, 0, :], axis=0)
    mean = s / m_total
    var = jnp.maximum(sq / m_total - mean * mean, 0.0)
    scale = gamma_p * lax.rsqrt(var + BN_EPS)
    shift = beta_p - mean * scale

    # ---- pass 2: fused normalize + affine + ReLU over lane-dense tiles ----
    tm = _largest_divisor_leq(m_total, 512)
    y2 = y.reshape(m_total, cpad)
    out2 = pl.pallas_call(
        _bn_relu_kernel,
        grid=(m_total // tm,),
        in_specs=[
            pl.BlockSpec((tm, cpad), lambda i: (i, 0)),
            pl.BlockSpec((1, cpad), lambda i: (0, 0)),
            pl.BlockSpec((1, cpad), lambda i: (0, 0)),
        ],
        out_specs=pl.BlockSpec((tm, cpad), lambda i: (i, 0)),
        out_shape=jax.ShapeDtypeStruct((m_total, cpad), jnp.float32),
        compiler_params=pltpu.CompilerParams(
            dimension_semantics=("parallel",),
            vmem_limit_bytes=_VMEM_LIMIT),
    )(y2, scale.reshape(1, cpad), shift.reshape(1, cpad))

    out_nhwc = out2.reshape(N, H, W, cpad)[..., :Cout]
    # TODO(synk): fold this NHWC->NCHW transpose into pass 2's output index_map
    # (or keep activations NHWC end-to-end) to avoid an extra HBM round trip.
    return jnp.transpose(out_nhwc, (0, 3, 1, 2))


def reference_conv_bn_relu(x, weight, gamma, beta):
    """Pure-JAX f32 reference matching the PyTorch forward (training-mode BN)."""
    y = lax.conv_general_dilated(
        x.astype(jnp.float32), weight.astype(jnp.float32),
        window_strides=(1, 1), padding=((1, 1), (1, 1)),
        dimension_numbers=("NCHW", "OIHW", "NCHW"))
    mean = jnp.mean(y, axis=(0, 2, 3), keepdims=True)
    var = jnp.mean((y - mean) ** 2, axis=(0, 2, 3), keepdims=True)
    yhat = (y - mean) * lax.rsqrt(var + BN_EPS)
    yhat = yhat * gamma.reshape(1, -1, 1, 1) + beta.reshape(1, -1, 1, 1)
    return jnp.maximum(yhat, 0.0)


if __name__ == "__main__":
    key = jax.random.PRNGKey(0)
    kx, kw = jax.random.split(key)

    N, Cin, H, W = 2, 4, 16, 16
    Cout, ksize = 8, 3

    x = jax.random.normal(kx, (N, Cin, H, W), dtype=jnp.float32)
    fan_in = Cin * ksize * ksize
    weight = jax.random.normal(kw, (Cout, Cin, ksize, ksize),
                               dtype=jnp.float32) * (2.0 / fan_in) ** 0.5
    gamma = jnp.ones((Cout,), jnp.float32)
    beta = jnp.zeros((Cout,), jnp.float32)

    out = jax.block_until_ready(conv_bn_relu(x, weight, gamma, beta))
    ref = jax.block_until_ready(reference_conv_bn_relu(x, weight, gamma, beta))

    assert out.shape == (N, Cout, H, W), out.shape
    # Tolerance accounts for bf16 MXU operands (f32 accumulation + f32 BN math).
    if not jnp.allclose(out, ref, atol=5e-2, rtol=5e-2):
        raise AssertionError("Pallas ConvBNReLU does not match reference")

    print("KERNEL_OK")
</pallas_src>

<mosaic_0001>
module attributes {stable_mosaic.version = 11 : i64} {
  func.func @_conv_stats_kernel(%arg0: i32, %arg1: i32, %arg2: memref<1x18x18x4xbf16, #tpu.memory_space<vmem>>, %arg3: memref<9x4x128xbf16, #tpu.memory_space<vmem>>, %arg4: memref<1x16x16x128xf32, #tpu.memory_space<vmem>>, %arg5: memref<1x1x128xf32, #tpu.memory_space<vmem>>, %arg6: memref<1x1x128xf32, #tpu.memory_space<vmem>>) attributes {dimension_semantics = [#tpu.dimension_semantics<parallel>, #tpu.dimension_semantics<arbitrary>], iteration_bounds = array<i64: 2, 1>, scalar_prefetch = 0 : i64, scratch_operands = 0 : i64, tpu.core_type = #tpu.core_type<tc>, window_params = [{transform_indices = @transform_0, window_bounds = array<i64: 1, 18, 18, 4>}, {pipeline_mode = #tpu.pipeline_mode<synchronous>, transform_indices = @transform_1, window_bounds = array<i64: 9, 4, 128>}, {transform_indices = @transform_2, window_bounds = array<i64: 1, 16, 16, 128>}, {transform_indices = @transform_3, window_bounds = array<i64: 1, 1, 128>}, {transform_indices = @transform_4, window_bounds = array<i64: 1, 1, 128>}]} {
    %c16_i32 = arith.constant 16 : i32
    %0 = arith.muli %arg1, %c16_i32 : i32
    %c0 = arith.constant 0 : index
    %1 = arith.index_cast %0 : i32 to index
    %c0_0 = arith.constant 0 : index
    %c0_1 = arith.constant 0 : index
    %2 = vector.load %arg2[%c0, %1, %c0_0, %c0_1] : memref<1x18x18x4xbf16, #tpu.memory_space<vmem>>, vector<1x18x18x4xbf16>
    %3 = vector.shape_cast %2 : vector<1x18x18x4xbf16> to vector<18x18x4xbf16>
    %cst = arith.constant 0.000000e+00 : f32
    %4 = vector.broadcast %cst : f32 to vector<256x128xf32>
    %5 = vector.extract_strided_slice %3 {offsets = [0, 0, 0], sizes = [16, 18, 4], strides = [1, 1, 1]} : vector<18x18x4xbf16> to vector<16x18x4xbf16>
    %6 = vector.extract_strided_slice %5 {offsets = [0, 0, 0], sizes = [16, 16, 4], strides = [1, 1, 1]} : vector<16x18x4xbf16> to vector<16x16x4xbf16>
    %7 = vector.shape_cast %6 : vector<16x16x4xbf16> to vector<256x4xbf16>
    %c0_2 = arith.constant 0 : index
    %c0_3 = arith.constant 0 : index
    %c0_4 = arith.constant 0 : index
    %8 = vector.load %arg3[%c0_2, %c0_3, %c0_4] : memref<9x4x128xbf16, #tpu.memory_space<vmem>>, vector<1x4x128xbf16>
    %9 = vector.shape_cast %8 : vector<1x4x128xbf16> to vector<4x128xbf16>
    %cst_5 = arith.constant dense<0.000000e+00> : vector<256x128xf32>
    %10 = tpu.matmul %7, %9, %cst_5 {dimension_numbers = #tpu.dot_dimension_numbers<[1], [0], [0], [1], [0, 0, 1, 1], [], []>} : vector<256x4xbf16>, vector<4x128xbf16>, vector<256x128xf32> -> vector<256x128xf32>
    %11 = arith.addf %4, %10 : vector<256x128xf32>
    %12 = vector.extract_strided_slice %5 {offsets = [0, 1, 0], sizes = [16, 16, 4], strides = [1, 1, 1]} : vector<16x18x4xbf16> to vector<16x16x4xbf16>
    %13 = vector.shape_cast %12 : vector<16x16x4xbf16> to vector<256x4xbf16>
    %c1 = arith.constant 1 : index
    %c0_6 = arith.constant 0 : index
    %c0_7 = arith.constant 0 : index
    %14 = vector.load %arg3[%c1, %c0_6, %c0_7] : memref<9x4x128xbf16, #tpu.memory_space<vmem>>, vector<1x4x128xbf16>
    %15 = vector.shape_cast %14 : vector<1x4x128xbf16> to vector<4x128xbf16>
    %cst_8 = arith.constant dense<0.000000e+00> : vector<256x128xf32>
    %16 = tpu.matmul %13, %15, %cst_8 {dimension_numbers = #tpu.dot_dimension_numbers<[1], [0], [0], [1], [0, 0, 1, 1], [], []>} : vector<256x4xbf16>, vector<4x128xbf16>, vector<256x128xf32> -> vector<256x128xf32>
    %17 = arith.addf %11, %16 : vector<256x128xf32>
    %18 = vector.extract_strided_slice %5 {offsets = [0, 2, 0], sizes = [16, 16, 4], strides = [1, 1, 1]} : vector<16x18x4xbf16> to vector<16x16x4xbf16>
    %19 = vector.shape_cast %18 : vector<16x16x4xbf16> to vector<256x4xbf16>
    %c2 = arith.constant 2 : index
    %c0_9 = arith.constant 0 : index
    %c0_10 = arith.constant 0 : index
    %20 = vector.load %arg3[%c2, %c0_9, %c0_10] : memref<9x4x128xbf16, #tpu.memory_space<vmem>>, vector<1x4x128xbf16>
    %21 = vector.shape_cast %20 : vector<1x4x128xbf16> to vector<4x128xbf16>
    %cst_11 = arith.constant dense<0.000000e+00> : vector<256x128xf32>
    %22 = tpu.matmul %19, %21, %cst_11 {dimension_numbers = #tpu.dot_dimension_numbers<[1], [0], [0], [1], [0, 0, 1, 1], [], []>} : vector<256x4xbf16>, vector<4x128xbf16>, vector<256x128xf32> -> vector<256x128xf32>
    %23 = arith.addf %17, %22 : vector<256x128xf32>
    %24 = vector.extract_strided_slice %3 {offsets = [1, 0, 0], sizes = [16, 18, 4], strides = [1, 1, 1]} : vector<18x18x4xbf16> to vector<16x18x4xbf16>
    %25 = vector.extract_strided_slice %24 {offsets = [0, 0, 0], sizes = [16, 16, 4], strides = [1, 1, 1]} : vector<16x18x4xbf16> to vector<16x16x4xbf16>
    %26 = vector.shape_cast %25 : vector<16x16x4xbf16> to vector<256x4xbf16>
    %c3 = arith.constant 3 : index
    %c0_12 = arith.constant 0 : index
    %c0_13 = arith.constant 0 : index
    %27 = vector.load %arg3[%c3, %c0_12, %c0_13] : memref<9x4x128xbf16, #tpu.memory_space<vmem>>, vector<1x4x128xbf16>
    %28 = vector.shape_cast %27 : vector<1x4x128xbf16> to vector<4x128xbf16>
    %cst_14 = arith.constant dense<0.000000e+00> : vector<256x128xf32>
    %29 = tpu.matmul %26, %28, %cst_14 {dimension_numbers = #tpu.dot_dimension_numbers<[1], [0], [0], [1], [0, 0, 1, 1], [], []>} : vector<256x4xbf16>, vector<4x128xbf16>, vector<256x128xf32> -> vector<256x128xf32>
    %30 = arith.addf %23, %29 : vector<256x128xf32>
    %31 = vector.extract_strided_slice %24 {offsets = [0, 1, 0], sizes = [16, 16, 4], strides = [1, 1, 1]} : vector<16x18x4xbf16> to vector<16x16x4xbf16>
    %32 = vector.shape_cast %31 : vector<16x16x4xbf16> to vector<256x4xbf16>
    %c4 = arith.constant 4 : index
    %c0_15 = arith.constant 0 : index
    %c0_16 = arith.constant 0 : index
    %33 = vector.load %arg3[%c4, %c0_15, %c0_16] : memref<9x4x128xbf16, #tpu.memory_space<vmem>>, vector<1x4x128xbf16>
    %34 = vector.shape_cast %33 : vector<1x4x128xbf16> to vector<4x128xbf16>
    %cst_17 = arith.constant dense<0.000000e+00> : vector<256x128xf32>
    %35 = tpu.matmul %32, %34, %cst_17 {dimension_numbers = #tpu.dot_dimension_numbers<[1], [0], [0], [1], [0, 0, 1, 1], [], []>} : vector<256x4xbf16>, vector<4x128xbf16>, vector<256x128xf32> -> vector<256x128xf32>
    %36 = arith.addf %30, %35 : vector<256x128xf32>
    %37 = vector.extract_strided_slice %24 {offsets = [0, 2, 0], sizes = [16, 16, 4], strides = [1, 1, 1]} : vector<16x18x4xbf16> to vector<16x16x4xbf16>
    %38 = vector.shape_cast %37 : vector<16x16x4xbf16> to vector<256x4xbf16>
    %c5 = arith.constant 5 : index
    %c0_18 = arith.constant 0 : index
    %c0_19 = arith.constant 0 : index
    %39 = vector.load %arg3[%c5, %c0_18, %c0_19] : memref<9x4x128xbf16, #tpu.memory_space<vmem>>, vector<1x4x128xbf16>
    %40 = vector.shape_cast %39 : vector<1x4x128xbf16> to vector<4x128xbf16>
    %cst_20 = arith.constant dense<0.000000e+00> : vector<256x128xf32>
    %41 = tpu.matmul %38, %40, %cst_20 {dimension_numbers = #tpu.dot_dimension_numbers<[1], [0], [0], [1], [0, 0, 1, 1], [], []>} : vector<256x4xbf16>, vector<4x128xbf16>, vector<256x128xf32> -> vector<256x128xf32>
    %42 = arith.addf %36, %41 : vector<256x128xf32>
    %43 = vector.extract_strided_slice %3 {offsets = [2, 0, 0], sizes = [16, 18, 4], strides = [1, 1, 1]} : vector<18x18x4xbf16> to vector<16x18x4xbf16>
    %44 = vector.extract_strided_slice %43 {offsets = [0, 0, 0], sizes = [16, 16, 4], strides = [1, 1, 1]} : vector<16x18x4xbf16> to vector<16x16x4xbf16>
    %45 = vector.shape_cast %44 : vector<16x16x4xbf16> to vector<256x4xbf16>
    %c6 = arith.constant 6 : index
    %c0_21 = arith.constant 0 : index
    %c0_22 = arith.constant 0 : index
    %46 = vector.load %arg3[%c6, %c0_21, %c0_22] : memref<9x4x128xbf16, #tpu.memory_space<vmem>>, vector<1x4x128xbf16>
    %47 = vector.shape_cast %46 : vector<1x4x128xbf16> to vector<4x128xbf16>
    %cst_23 = arith.constant dense<0.000000e+00> : vector<256x128xf32>
    %48 = tpu.matmul %45, %47, %cst_23 {dimension_numbers = #tpu.dot_dimension_numbers<[1], [0], [0], [1], [0, 0, 1, 1], [], []>} : vector<256x4xbf16>, vector<4x128xbf16>, vector<256x128xf32> -> vector<256x128xf32>
    %49 = arith.addf %42, %48 : vector<256x128xf32>
    %50 = vector.extract_strided_slice %43 {offsets = [0, 1, 0], sizes = [16, 16, 4], strides = [1, 1, 1]} : vector<16x18x4xbf16> to vector<16x16x4xbf16>
    %51 = vector.shape_cast %50 : vector<16x16x4xbf16> to vector<256x4xbf16>
    %c7 = arith.constant 7 : index
    %c0_24 = arith.constant 0 : index
    %c0_25 = arith.constant 0 : index
    %52 = vector.load %arg3[%c7, %c0_24, %c0_25] : memref<9x4x128xbf16, #tpu.memory_space<vmem>>, vector<1x4x128xbf16>
    %53 = vector.shape_cast %52 : vector<1x4x128xbf16> to vector<4x128xbf16>
    %cst_26 = arith.constant dense<0.000000e+00> : vector<256x128xf32>
    %54 = tpu.matmul %51, %53, %cst_26 {dimension_numbers = #tpu.dot_dimension_numbers<[1], [0], [0], [1], [0, 0, 1, 1], [], []>} : vector<256x4xbf16>, vector<4x128xbf16>, vector<256x128xf32> -> vector<256x128xf32>
    %55 = arith.addf %49, %54 : vector<256x128xf32>
    %56 = vector.extract_strided_slice %43 {offsets = [0, 2, 0], sizes = [16, 16, 4], strides = [1, 1, 1]} : vector<16x18x4xbf16> to vector<16x16x4xbf16>
    %57 = vector.shape_cast %56 : vector<16x16x4xbf16> to vector<256x4xbf16>
    %c8 = arith.constant 8 : index
    %c0_27 = arith.constant 0 : index
    %c0_28 = arith.constant 0 : index
    %58 = vector.load %arg3[%c8, %c0_27, %c0_28] : memref<9x4x128xbf16, #tpu.memory_space<vmem>>, vector<1x4x128xbf16>
    %59 = vector.shape_cast %58 : vector<1x4x128xbf16> to vector<4x128xbf16>
    %cst_29 = arith.constant dense<0.000000e+00> : vector<256x128xf32>
    %60 = tpu.matmul %57, %59, %cst_29 {dimension_numbers = #tpu.dot_dimension_numbers<[1], [0], [0], [1], [0, 0, 1, 1], [], []>} : vector<256x4xbf16>, vector<4x128xbf16>, vector<256x128xf32> -> vector<256x128xf32>
    %61 = arith.addf %55, %60 : vector<256x128xf32>
    %62 = vector.shape_cast %61 : vector<256x128xf32> to vector<1x16x16x128xf32>
    %c0_30 = arith.constant 0 : index
    %c0_31 = arith.constant 0 : index
    %c0_32 = arith.constant 0 : index
    %c0_33 = arith.constant 0 : index
    %63 = vector.load %arg4[%c0_30, %c0_31, %c0_32, %c0_33] : memref<1x16x16x128xf32, #tpu.memory_space<vmem>>, vector<1x16x16x128xf32>
    tpu.vector_store %arg4[%c0_30, %c0_31, %c0_32, %c0_33], %62 {strides = array<i32>} : memref<1x16x16x128xf32, #tpu.memory_space<vmem>>, vector<1x16x16x128xf32>,
    %c0_i32 = arith.constant 0 : i32
    %64 = arith.cmpi eq, %arg1, %c0_i32 : i32
    %65 = arith.extui %64 : i1 to i32
    %c0_i32_34 = arith.constant 0 : i32
    %66 = arith.cmpi ne, %65, %c0_i32_34 : i32
    scf.if %66 {
      %cst_49 = arith.constant 0.000000e+00 : f32
      %80 = vector.broadcast %cst_49 : f32 to vector<1x1x128xf32>
      %c0_50 = arith.constant 0 : index
      %c0_51 = arith.constant 0 : index
      %c0_52 = arith.constant 0 : index
      %81 = vector.load %arg5[%c0_50, %c0_51, %c0_52] : memref<1x1x128xf32, #tpu.memory_space<vmem>>, vector<1x1x128xf32>
      tpu.vector_store %arg5[%c0_50, %c0_51, %c0_52], %80 {strides = array<i32>} : memref<1x1x128xf32, #tpu.memory_space<vmem>>, vector<1x1x128xf32>,
      %cst_53 = arith.constant 0.000000e+00 : f32
      %82 = vector.broadcast %cst_53 : f32 to vector<1x1x128xf32>
      %c0_54 = arith.constant 0 : index
      %c0_55 = arith.constant 0 : index
      %c0_56 = arith.constant 0 : index
      %83 = vector.load %arg6[%c0_54, %c0_55, %c0_56] : memref<1x1x128xf32, #tpu.memory_space<vmem>>, vector<1x1x128xf32>
      tpu.vector_store %arg6[%c0_54, %c0_55, %c0_56], %82 {strides = array<i32>} : memref<1x1x128xf32, #tpu.memory_space<vmem>>, vector<1x1x128xf32>,
    } else {
    }
    %c0_35 = arith.constant 0 : index
    %c0_36 = arith.constant 0 : index
    %c0_37 = arith.constant 0 : index
    %67 = vector.load %arg5[%c0_35, %c0_36, %c0_37] : memref<1x1x128xf32, #tpu.memory_space<vmem>>, vector<1x1x128xf32>
    %cst_38 = arith.constant dense<0.000000e+00> : vector<128xf32>
    %68 = vector.multi_reduction <add>, %61, %cst_38 [0] : vector<256x128xf32> to vector<128xf32>
    %69 = vector.shape_cast %68 : vector<128xf32> to vector<1x128xf32>
    %70 = vector.shape_cast %69 : vector<1x128xf32> to vector<1x1x128xf32>
    %71 = arith.addf %67, %70 : vector<1x1x128xf32>
    %c0_39 = arith.constant 0 : index
    %c0_40 = arith.constant 0 : index
    %c0_41 = arith.constant 0 : index
    %72 = vector.load %arg5[%c0_39, %c0_40, %c0_41] : memref<1x1x128xf32, #tpu.memory_space<vmem>>, vector<1x1x128xf32>
    tpu.vector_store %arg5[%c0_39, %c0_40, %c0_41], %71 {strides = array<i32>} : memref<1x1x128xf32, #tpu.memory_space<vmem>>, vector<1x1x128xf32>,
    %c0_42 = arith.constant 0 : index
    %c0_43 = arith.constant 0 : index
    %c0_44 = arith.constant 0 : index
    %73 = vector.load %arg6[%c0_42, %c0_43, %c0_44] : memref<1x1x128xf32, #tpu.memory_space<vmem>>, vector<1x1x128xf32>
    %74 = arith.mulf %61, %61 : vector<256x128xf32>
    %cst_45 = arith.constant dense<0.000000e+00> : vector<128xf32>
    %75 = vector.multi_reduction <add>, %74, %cst_45 [0] : vector<256x128xf32> to vector<128xf32>
    %76 = vector.shape_cast %75 : vector<128xf32> to vector<1x128xf32>
    %77 = vector.shape_cast %76 : vector<1x128xf32> to vector<1x1x128xf32>
    %78 = arith.addf %73, %77 : vector<1x1x128xf32>
    %c0_46 = arith.constant 0 : index
    %c0_47 = arith.constant 0 : index
    %c0_48 = arith.constant 0 : index
    %79 = vector.load %arg6[%c0_46, %c0_47, %c0_48] : memref<1x1x128xf32, #tpu.memory_space<vmem>>, vector<1x1x128xf32>
    tpu.vector_store %arg6[%c0_46, %c0_47, %c0_48], %78 {strides = array<i32>} : memref<1x1x128xf32, #tpu.memory_space<vmem>>, vector<1x1x128xf32>,
    return
  }
  func.func @transform_0(%arg0: i32, %arg1: i32) -> (i32, i32, i32, i32) {
    %c0_i32 = arith.constant 0 : i32
    %c0_i32_0 = arith.constant 0 : i32
    %c0_i32_1 = arith.constant 0 : i32
    %c0_i32_2 = arith.constant 0 : i32
    return %arg0, %c0_i32, %c0_i32_0, %c0_i32_1 : i32, i32, i32, i32
  }
  func.func @transform_1(%arg0: i32, %arg1: i32) -> (i32, i32, i32) {
    %c0_i32 = arith.constant 0 : i32
    %c0_i32_0 = arith.constant 0 : i32
    %c0_i32_1 = arith.constant 0 : i32
    %c0_i32_2 = arith.constant 0 : i32
    return %c0_i32, %c0_i32_0, %c0_i32_1 : i32, i32, i32
  }
  func.func @transform_2(%arg0: i32, %arg1: i32) -> (i32, i32, i32, i32) {
    %c0_i32 = arith.constant 0 : i32
    %c0_i32_0 = arith.constant 0 : i32
    %c0_i32_1 = arith.constant 0 : i32
    return %arg0, %arg1, %c0_i32, %c0_i32_0 : i32, i32, i32, i32
  }
  func.func @transform_3(%arg0: i32, %arg1: i32) -> (i32, i32, i32) {
    %c0_i32 = arith.constant 0 : i32
    %c0_i32_0 = arith.constant 0 : i32
    %c0_i32_1 = arith.constant 0 : i32
    return %arg0, %c0_i32, %c0_i32_0 : i32, i32, i32
  }
  func.func @transform_4(%arg0: i32, %arg1: i32) -> (i32, i32, i32) {
    %c0_i32 = arith.constant 0 : i32
    %c0_i32_0 = arith.constant 0 : i32
    %c0_i32_1 = arith.constant 0 : i32
    return %arg0, %c0_i32, %c0_i32_0 : i32, i32, i32
  }
}

</mosaic_0001>

<bundles_post_ra>
// kernel: tpu_custom_call.1
= control target key start
LH: loop header
LB: loop body
LE: loop exit
PB: predicated region body
PF: predicated region fallthrough
CT: control target
= control target key end

     0   :  { %10 = vsyncpa [#allocation3], 0  ;;  %s5707_s0 = inlined_call_operand.vmem [shape: bf16[2,18,18,4], index: 0, kind: input, shape index: {}]   ;;  %s5708_s1 = inlined_call_operand.vmem [shape: bf16[9,4,128], index: 1, kind: input, shape index: {}]   ;;  %s5709_s2 = inlined_call_operand.hbm [shape: f32[2,16,16,128], index: 2, kind: output, shape index: {0}]   ;;  %s5710_s3 = inlined_call_operand.hbm [shape: f32[2,1,128], index: 3, kind: output, shape index: {1}]   ;;  %s5711_s4 = inlined_call_operand.hbm [shape: f32[2,1,128], index: 4, kind: output, shape index: {2}]  }
   0x1   :  { %12 = vsyncpa [#allocation3 + $0x1], 0 }
   0x2   :  { %13 = vsyncpa [#allocation5], 0 }
   0x3   :  { %15 = vsyncpa [#allocation5 + $0x1], 0  ;;  %s4504_s15 = smov 0   ;;  %s4506_s16 = smov 0  }
   0x4   :  { %s4508_s17 = smov 0   ;;  %s4510_s18 = smov 0  }
   0x5   :  { %s4512_s19 = smov 0   ;;  %s4514_s20 = smov 0  }
   0x6 LB: > { %s3276_s21 = sadd.s32 4294967295, %s4471_s20   ;;  %s3277_s22 = sadd.s32 4294967294, %s4471_s20   ;;  %s4471_s20 = sphi %s4514_s20, %s21_s20   ;;  %s4467_s19 = sphi %s4512_s19, %s5795_s19   ;;  %s4463_s18 = sphi %s4510_s18, %s5794_s18   ;;  %s4459_s17 = sphi %s4508_s17, %s5793_s17   ;;  %s4455_s16 = sphi %s4506_s16, %s5792_s16   ;;  %s4451_s15 = sphi %s4504_s15, %s5791_s15  }
   0x7   : > { %s33_s23 = sadd.s32 1, %s4467_s19  ;;  %s89_s24 = sadd.s32 1, %s4459_s17 }
   0x8   : > { %p35_p0 = scmp.ge.s32.totalorder %s33_s23, 2  ;;  %p99_p1 = scmp.ne.s32.totalorder %s4459_s17, %s4455_s16 }
   0x9   : > { %p100_p2 = scmp.eq.s32.totalorder %s3276_s21, 1  ;;  %p105_p3 = scmp.ne.s32.totalorder %s4455_s16, %s4451_s15 }
   0xa   : > { %s5797_s23 = smov (%p35_p0, %s33_s23), 0  ;;  %p106_p5 = scmp.eq.s32.totalorder %s3277_s22, 1 }
   0xb   : > { %p4546_p4 = por %p100_p2, %p99_p1  ;;  %s84_s26 = ssub.s32 %s4467_s19, %s5797_s23 }
   0xc   : > { %p3280_p6 = scmp.ge.s32.totalorder %s4471_s20, 1  ;;  %p87_p7 = scmp.eq.s32.totalorder %s84_s26, 0 }
   0xd   : > { %p4555_p8 = por %p106_p5, %p105_p3  ;;  %p187_p9 = scmp.lt.s32.totalorder %s4471_s20, 3 }
   0xe   : > { %s4561_s28 = scalar_select %p87_p7, %s4459_s17, %s89_s24  }
   0xf   : > { %p188_p10 = pnand %p3280_p6, %p187_p9 }
  0x11   : > { %191 = sbr.rel (%p188_p10) target bundleno = 627 (0x273), region = 28 }
  0x18   : > { %v3283_v0 = vld [vmem:[%s5708_s1 + $0x2] sm:$0x3]  ;;  %vm773_vm0 = vcmask 1041408   ;;  %v3415_v1 = vld [vmem:[%s5708_s1 + $0x8] sm:$0x3]  ;;  %p221_p11 = scmp.lt.s32.totalorder %s4463_s18, 1 }
  0x19   : > { %4232 = vmatprep.subr.msk.bf16.mxu1 %vm773_vm0, %v3283_v0  ;;  %4236 = vmatprep.subr.msk.bf16.mxu0 %vm773_vm0, %v3415_v1  ;;  %v775_v2 = vsel %vm773_vm0, %v3283_v0, 0  ;;  %v4574_v3 = vsel %vm773_vm0, %v3415_v1, 0  ;;  %v286_v4 = vld [vmem:[%s5708_s1] sm:$0x3]  ;;  %v3434_v5 = vld [vmem:[%s5708_s1 + $0xa] sm:$0x3] }
  0x1a   : > { %5745 = vst [vmem:[#allocation9_spill] sm:$0xff] %v4574_v3  ;;  %3669 = vmatpush3.bf16.msra.mxu1 %v775_v2  ;;  %3805 = vmatpush3.bf16.msra.mxu0 %v4574_v3  ;;  %s222_s7 = scalar_select %p221_p11, %s4463_s18, 1  ;;  %vm287_vm1 = vsmask.f32 3328  ;;  %vm288_vm2 = vsmask.f32 7440 }
  0x1b   : > { %4233 = vmatprep.subr.msk.bf16.mxu1 %vm773_vm0, %v286_v4  ;;  %4238 = vmatprep.subr.msk.bf16.mxu0 %vm773_vm0, %v3434_v5  ;;  %v4592_v6 = vsel %vm773_vm0, %v286_v4, 0  ;;  %v4595_v7 = vsel %vm773_vm0, %v3434_v5, 0  ;;  %v4600_v8 = vld [vmem:[%s5708_s1 + $0xc] sm:$0x3]  ;;  %vm724_vm3 = vcmask 31744   ;;  %vm4636_vm4 = vmor %vm287_vm1, %vm288_vm2  ;;  %vm1246_vm5 = vcmask 1042432  }
  0x1c   : > { %s4242_s12 = smul.u32 216, %s222_s7  ;;  %v4624_v20 = vsel %vm773_vm0, %v4600_v8, 0  ;;  %vm1247_vm6 = vcmask 1046532   ;;  %s5518_s14 = sand.u32 1, %s4455_s16  }
  0x1d   : > { %vm4817_vm7 = vmor %vm1246_vm5, %vm1247_vm6  ;;  %s5525_s26 = scalar_lea.vmem [#allocation6], %s5518_s14  ;;  %s3281_s29 = sshll.u32 %s5518_s14, 8 }
  0x1e   : > { %s4589_s24 = scalar_lea.vmem %s5707_s0, %s4242_s12  ;;  %s5539_s30 = scalar_lea.vmem [#allocation2], %s3281_s29 }
  0x1f   : > { %v4603_v9 = vld [vmem:[%s4589_s24] sm:$0xf]  ;;  %v4606_v10 = vld [vmem:[%s4589_s24 + $0x4] sm:$0xf]  ;;  %v234_v11 = vld [vmem:[%s4589_s24 + $0x8] sm:$0x1] }
  0x20   : > { %v291_v12 = vshrl.u32 %v4603_v9, 16  ;;  %v294_v13 = vshll.u32 %v4603_v9, 16  ;;  %v300_v14 = vshll.u32 %v4606_v10, 16  ;;  %v304_v15 = vshrl.u32 %v4606_v10, 16  ;;  %v4614_v16 = vld [vmem:[%s4589_s24 + $0xc] sm:$0xf] }
  0x21   : > { %v310_v17 = vshll.u32 %v234_v11, 16  ;;  %v4617_v18 = vld [vmem:[%s4589_s24 + $0x10] sm:$0xf]  ;;  %v4620_v19 = vld [vmem:[%s4589_s24 + $0x14] sm:$0x1]  ;;  %v315_v26 = vshrl.u32 %v4614_v16, 16 }
  0x22   : > { %v293_v21 = vrot.slane %v291_v12, 4  ;;  %v296_v22 = vrot.slane %v294_v13, 5  ;;  %v302_v23 = vrot.slane %v300_v14, 5  ;;  %v306_v24 = vrot.slane %v304_v15, 4  ;;  %v4632_v33 = vld [vmem:[%s4589_s24 + $0x18] sm:$0xf] }
  0x23   : > { %v312_v25 = vrot.slane %v310_v17, 5  ;;  %v318_v27 = vshll.u32 %v4614_v16, 16  ;;  %v324_v28 = vshll.u32 %v4617_v18, 16  ;;  %v328_v31 = vshrl.u32 %v4617_v18, 16  ;;  %v4645_v39 = vld [vmem:[%s4589_s24 + $0x1c] sm:$0xf] }
  0x24   : > { %v297_v29 = vor.u32 %v296_v22, %v293_v21  ;;  %v307_v30 = vor.u32 %v306_v24, %v302_v23  ;;  %v334_v32 = vshll.u32 %v4620_v19, 16  ;;  %v317_v35 = vrot.slane %v315_v26, 4  ;;  %v4649_v46 = vld [vmem:[%s4589_s24 + $0x20] sm:$0x1]  ;;  %v4659_v57 = vld [vmem:[%s4589_s24 + $0x24] sm:$0xf] }
  0x25   : > { %v320_v36 = vrot.slane %v318_v27, 5  ;;  %v326_v37 = vrot.slane %v324_v28, 5  ;;  %v4642_v38 = vcombine.low %v4614_v16, %v4617_v18  ;;  %v330_v42 = vrot.slane %v328_v31, 4  ;;  %v4664_v62 = vld [vmem:[%s4589_s24 + $0x28] sm:$0xf]  ;;  %s3514_s5 = sshll.u32 %s4463_s18, 12 }
  0x26   : > { %v298_v40 = vrot.slane %v297_v29, 4  ;;  %v308_v41 = vrot.slane %v307_v30, 4  ;;  %v336_v43 = vrot.slane %v334_v32, 5  ;;  %v1261_v45 = vrot.slane %v4620_v19, 5  ;;  %v4672_v4 = vld [vmem:[%s4589_s24 + $0x2c] sm:$0x1]  ;;  %s5580_s9 = scalar_lea.hbm %s5709_s2, %s3514_s5 }
  0x27   : > { %v321_v44 = vor.u32 %v320_v36, %v317_v35  ;;  %v339_v47 = vshrl.u32 %v4632_v33, 16  ;;  %v342_v48 = vshll.u32 %v4632_v33, 16  ;;  %v331_v51 = vor.u32 %v330_v42, %v326_v37  ;;  %v4678_v14 = vld [vmem:[%s4589_s24 + $0x30] sm:$0xf]  ;;  %v4690_v28 = vld [vmem:[%s4589_s24 + $0x34] sm:$0xf] }
  0x28   : > { %v303_v49 = vsel %vm4636_vm4, %v298_v40, %v302_v23  ;;  %v313_v50 = vsel %vm4636_vm4, %v308_v41, %v312_v25  ;;  %v348_v52 = vshll.u32 %v4645_v39, 16  ;;  %v352_v60 = vshrl.u32 %v4645_v39, 16  ;;  %v4685_v23 = vld [vmem:[%s5708_s1 + $0x4] sm:$0x3]  ;;  %v4697_v32 = vld [vmem:[%s4589_s24 + $0x38] sm:$0x1] }
  0x29   : > { %v3284_v53 = vcombine.low %v303_v49, %v313_v50  ;;  %v322_v54 = vrot.slane %v321_v44, 4  ;;  %v341_v55 = vrot.slane %v339_v47, 4  ;;  %v344_v56 = vrot.slane %v342_v48, 5  ;;  %v4705_v48 = vld [vmem:[%s4589_s24 + $0x3c] sm:$0xf]  ;;  %s3122_s6 = sshll.u32 %s5539_s30, 4  ;;  %s5582_s6 = int_to_ptr.vmem [resolvable:$true] %s3122_s6 }
  0x2a   : > { %v332_v58 = vrot.slane %v331_v51, 4  ;;  %v350_v59 = vrot.slane %v348_v52, 5  ;;  %v358_v61 = vshll.u32 %v4649_v46, 16  ;;  %v1265_v1 = vrot.slane %v4645_v39, 5  ;;  %v4713_v52 = vld [vmem:[%s4589_s24 + $0x40] sm:$0xf] }
  0x2b   : > { %3670 = vmatprep.mubr.msk.bf16.mxu1 %vm724_vm3, %v3284_v53  ;;  %v327_v63 = vsel %vm4636_vm4, %v322_v54, %v326_v37  ;;  %v345_v0 = vor.u32 %v344_v56, %v341_v55  ;;  %v1268_v2 = vrot.slane %v4649_v46, 5  ;;  %v354_v11 = vrot.slane %v352_v60, 4  ;;  %s3098_s10 = scalar_lea.sflag [#allocation3], %s5518_s14  ;;  %s4333_s11 = scalar_lea.vmem %s5582_s6, 4096 }
  0x2c   : > { %v337_v5 = vsel %vm4636_vm4, %v332_v58, %v336_v43  ;;  %v360_v12 = vrot.slane %v358_v61, 5  ;;  %v363_v13 = vshrl.u32 %v4659_v57, 16  ;;  %v366_v21 = vshll.u32 %v4659_v57, 16  ;;  %p4334_p12 = scmp.ne.s32.totalorder %s5582_s6, %s4333_s11  ;;  %s4474_s12 = smov [#allocation2]  }
  0x2d   : > { %v3285_v15 = vcombine.low %v327_v63, %v337_v5  ;;  %v346_v17 = vrot.slane %v345_v0, 4  ;;  %v372_v22 = vshll.u32 %v4664_v62, 16  ;;  %v355_v24 = vor.u32 %v354_v11, %v350_v59  ;;  %v4725_v5 = vld [vmem:[%s4589_s24 + $0x44] sm:$0x1]  ;;  %s4337_s13 = sshll.u32 %s4474_s12, 4  ;;  %s4338_s13 = int_to_ptr.vmem [resolvable:$false] %s4337_s13 }
  0x2e   : > { %v365_v25 = vrot.slane %v363_v13, 4  ;;  %v376_v26 = vshrl.u32 %v4664_v62, 16  ;;  %v382_v27 = vshll.u32 %v4672_v4, 16  ;;  %v368_v30 = vrot.slane %v366_v21, 5  ;;  %v4730_v13 = vld [vmem:[%s4589_s24 + $0x48] sm:$0xf]  ;;  %p4335_p13 = pnand %p4334_p12, %p4546_p4  ;;  %p4340_p1 = scmp.lt.s32.totalorder %s5582_s6, %s4338_s13 }
  0x2f   : > { %3806 = vmatprep.mubr.msk.bf16.mxu0 %vm724_vm3, %v3285_v15  ;;  %3671 = vmatmul.mubr.msk.bf16.vlgmr.msra.gmra.mrb[0].mxu1 %vm724_vm3, %v3285_v15  ;;  %v351_v29 = vsel %vm4636_vm4, %v346_v17, %v350_v59  ;;  %v374_v31 = vrot.slane %v372_v22, 5  ;;  %v387_v35 = vshrl.u32 %v4678_v14, 16  ;;  %v356_v36 = vrot.slane %v355_v24, 4  ;;  %v4737_v24 = vld [vmem:[%s4589_s24 + $0x4c] sm:$0xf]  ;;  %s4339_s29 = scalar_lea.vmem %s4338_s13, 8192 }
  0x30   : > { %3703 = vmatpush3.bf16.msra.mxu1 %v4592_v6  ;;  %v378_v37 = vrot.slane %v376_v26, 4  ;;  %v384_v40 = vrot.slane %v382_v27, 5  ;;  %v390_v41 = vshll.u32 %v4678_v14, 16  ;;  %v369_v42 = vor.u32 %v368_v30, %v365_v25  ;;  %p4336_p0 = pneg %p4335_p13  ;;  %p4341_p2 = scmp.lt.s32.totalorder %s4339_s29, %s4333_s11 }
  0x31   : > { %v389_v43 = vrot.slane %v387_v35, 4  ;;  %v396_v44 = vshll.u32 %v4690_v28, 16  ;;  %v400_v47 = vshrl.u32 %v4690_v28, 16  ;;  %4234 = vmatprep.subr.msk.bf16.mxu1 %vm773_vm0, %v4685_v23  ;;  %v361_v49 = vsel %vm4636_vm4, %v356_v36, %v360_v12 }
  0x32   : > { %v379_v6 = vor.u32 %v378_v37, %v374_v31  ;;  %v392_v50 = vrot.slane %v390_v41, 5  ;;  %v406_v51 = vshll.u32 %v4697_v32, 16  ;;  %v4715_v53 = vcombine.low %v351_v29, %v361_v49  ;;  %p4342_p3 = por %p4341_p2, %p4340_p1 }
  0x33   : > { %v370_v54 = vrot.slane %v369_v42, 4  ;;  %v398_v55 = vrot.slane %v396_v44, 5  ;;  %v402_v56 = vrot.slane %v400_v47, 4  ;;  %v411_v61 = vshrl.u32 %v4705_v48, 16  ;;  %v4759_v42 = vld [vmem:[%s4589_s24 + $0x54] sm:$0xf] }
  0x34   : > { %5748 = vst [vmem:[#allocation10_spill] sm:$0xff] %v4715_v53  ;;  %v380_v58 = vrot.slane %v379_v6, 4  ;;  %v393_v59 = vor.u32 %v392_v50, %v389_v43  ;;  %v408_v60 = vrot.slane %v406_v51, 5  ;;  %3807 = vmatmul.mubr.msk.bf16.vlgmr.msra.gmra.mrb[0].mxu0 %vm724_vm3, %v4715_v53  ;;  %3674 = vmatprep.mubr.msk.bf16.mxu1 %vm724_vm3, %v4715_v53  ;;  %v414_v11 = vshll.u32 %v4705_v48, 16  ;;  %5750 = vst [vmem:[#allocation12_spill] sm:$0xff] %v4759_v42  ;;  %p4343_p5 = pnand %p4342_p3, %p4336_p0 }
  0x35   : > { %v375_v63 = vsel %vm4636_vm4, %v370_v54, %v374_v31  ;;  %v403_v0 = vor.u32 %v402_v56, %v398_v55  ;;  %v420_v12 = vshll.u32 %v4713_v52, 16  ;;  %3839 = vmatpush3.bf16.msra.mxu0 %v4595_v7  ;;  %v413_v21 = vrot.slane %v411_v61, 4  ;;  %v4764_v6 = vld [vmem:[%s4589_s24 + $0x58] sm:$0xf] }
  0x36   : > { %v385_v15 = vsel %vm4636_vm4, %v380_v58, %v384_v40  ;;  %v394_v17 = vrot.slane %v393_v59, 4  ;;  %v424_v22 = vshrl.u32 %v4713_v52, 16  ;;  %v416_v27 = vrot.slane %v414_v11, 5  ;;  %4239 = vmatprep.subr.msk.bf16.mxu0 %vm773_vm0, %v4600_v8  ;;  %v4754_v8 = vld [vmem:[%s4589_s24 + $0x50] sm:$0x1] }
  0x37   : > { %v4739_v25 = vcombine.low %v375_v63, %v385_v15  ;;  %v404_v26 = vrot.slane %v403_v0, 4  ;;  %v422_v29 = vrot.slane %v420_v12, 5  ;;  %v430_v31 = vshll.u32 %v4725_v5, 16  ;;  %v4777_v11 = vld [vmem:[%s4589_s24 + $0x5c] sm:$0x1] }
  0x38   : > { %v399_v7 = vsel %vm4636_vm4, %v394_v17, %v398_v55  ;;  %v426_v30 = vrot.slane %v424_v22, 4  ;;  %v435_v35 = vshrl.u32 %v4730_v13, 16  ;;  %v417_v37 = vor.u32 %v416_v27, %v413_v21  ;;  %v4781_v15 = vld [vmem:[%s4589_s24 + $0x60] sm:$0xf]  ;;  %v4786_v27 = vld [vmem:[%s4589_s24 + $0x64] sm:$0xf] }
  0x39   : > { %5749 = vst [vmem:[#allocation11_spill] sm:$0xff] %v4739_v25  ;;  %3810 = vmatprep.mubr.msk.bf16.mxu0 %vm724_vm3, %v4739_v25  ;;  %3675 = vmatmul.mubr.msk.bf16.gmra.mrb[4].mxu1 %vm724_vm3, %v4739_v25  ;;  %v409_v36 = vsel %vm4636_vm4, %v404_v26, %v408_v60  ;;  %v438_v40 = vshll.u32 %v4730_v13, 16  ;;  %v444_v41 = vshll.u32 %v4737_v24, 16  ;;  %v432_v47 = vrot.slane %v430_v31, 5  ;;  %v4998_v25 = vld [vmem:[%s4589_s24 + $0xa8] sm:$0xf] }
  0x3a   : > { %v4761_v43 = vcombine.low %v399_v7, %v409_v36  ;;  %v427_v44 = vor.u32 %v426_v30, %v422_v29  ;;  %v437_v49 = vrot.slane %v435_v35, 4  ;;  %v418_v50 = vrot.slane %v417_v37, 4 }
  0x3b   : > { %v440_v51 = vrot.slane %v438_v40, 5  ;;  %v446_v54 = vrot.slane %v444_v41, 5  ;;  %v448_v55 = vshrl.u32 %v4737_v24, 16  ;;  %v454_v58 = vshll.u32 %v4754_v8, 16 }
  0x3c   : > { %5751 = vst [vmem:[#allocation13_spill] sm:$0xff] %v4761_v43  ;;  %3678 = vmatprep.mubr.msk.bf16.mxu1 %vm724_vm3, %v4761_v43  ;;  %v428_v56 = vrot.slane %v427_v44, 4  ;;  %v459_v59 = vshrl.u32 %v4759_v42, 16  ;;  %v462_v60 = vshll.u32 %v4759_v42, 16  ;;  %3811 = vmatmul.mubr.msk.bf16.gmra.mrb[4].mxu0 %vm724_vm3, %v4761_v43  ;;  %v423_v61 = vsel %vm4636_vm4, %v418_v50, %v422_v29 }
  0x3d   : > { %v441_v63 = vor.u32 %v440_v51, %v437_v49  ;;  %v450_v0 = vrot.slane %v448_v55, 4  ;;  %v468_v12 = vshll.u32 %v4764_v6, 16  ;;  %v456_v21 = vrot.slane %v454_v58, 5 }
  0x3e   : > { %v433_v17 = vsel %vm4636_vm4, %v428_v56, %v432_v47  ;;  %v461_v22 = vrot.slane %v459_v59, 4  ;;  %v464_v26 = vrot.slane %v462_v60, 5  ;;  %v472_v36 = vshrl.u32 %v4764_v6, 16  ;;  %v4800_v47 = vld [vmem:[%s4589_s24 + $0x68] sm:$0x1] }
  0x3f   : > { %v4788_v7 = vcombine.low %v423_v61, %v433_v17  ;;  %v442_v29 = vrot.slane %v441_v63, 4  ;;  %v451_v30 = vor.u32 %v450_v0, %v446_v54  ;;  %v470_v31 = vrot.slane %v468_v12, 5 }
  0x40   : > { %v465_v35 = vor.u32 %v464_v26, %v461_v22  ;;  %v478_v37 = vshll.u32 %v4777_v11, 16  ;;  %v483_v40 = vshrl.u32 %v4781_v15, 16  ;;  %v486_v49 = vshll.u32 %v4781_v15, 16 }
  0x41   : > { %5752 = vst [vmem:[#allocation14_spill] sm:$0xff] %v4788_v7  ;;  %3814 = vmatprep.mubr.msk.bf16.mxu0 %vm724_vm3, %v4788_v7  ;;  %3679 = vmatmul.mubr.msk.bf16.gmra.mrb[8].mxu1 %vm724_vm3, %v4788_v7  ;;  %v447_v41 = vsel %vm4636_vm4, %v442_v29, %v446_v54  ;;  %v452_v44 = vrot.slane %v451_v30, 4  ;;  %v492_v50 = vshll.u32 %v4786_v27, 16  ;;  %v474_v55 = vrot.slane %v472_v36, 4  ;;  %v4808_v54 = vld [vmem:[%s4589_s24 + $0x6c] sm:$0xf] }
  0x42   : > { %v466_v51 = vrot.slane %v465_v35, 4  ;;  %v480_v56 = vrot.slane %v478_v37, 5  ;;  %v485_v58 = vrot.slane %v483_v40, 4  ;;  %v488_v60 = vrot.slane %v486_v49, 5  ;;  %v4824_v36 = vld [vmem:[%s4589_s24 + $0x70] sm:$0xf] }
  0x43   : > { %v457_v59 = vsel %vm4636_vm4, %v452_v44, %v456_v21  ;;  %v494_v61 = vrot.slane %v492_v50, 5  ;;  %v496_v63 = vshrl.u32 %v4786_v27, 16  ;;  %v475_v17 = vor.u32 %v474_v55, %v470_v31  ;;  %v4975_v7 = vld [vmem:[%s4589_s24 + $0xa0] sm:$0xf] }
  0x44   : > { %v4810_v0 = vcombine.low %v447_v41, %v457_v59  ;;  %v471_v12 = vsel %vm4636_vm4, %v466_v51, %v470_v31  ;;  %v502_v22 = vshll.u32 %v4800_v47, 16  ;;  %v489_v21 = vor.u32 %v488_v60, %v485_v58  ;;  %v4837_v51 = vld [vmem:[%s4589_s24 + $0x74] sm:$0x1] }
  0x45   : > { %v498_v29 = vrot.slane %v496_v63, 4  ;;  %v3349_v30 = vrot.slane %v4614_v16, 9  ;;  %v1258_v35 = vrot.slane %v4617_v18, 5  ;;  %v476_v31 = vrot.slane %v475_v17, 4 }
  0x46   : > { %5753 = vst [vmem:[#allocation15_spill] sm:$0xff] %v4810_v0  ;;  %3815 = vmatmul.mubr.msk.bf16.gmra.mrb[8].mxu0 %vm724_vm3, %v4810_v0  ;;  %3682 = vmatprep.mubr.msk.bf16.mxu1 %vm724_vm3, %v4810_v0  ;;  %v504_v37 = vrot.slane %v502_v22, 5  ;;  %v507_v40 = vshrl.u32 %v4808_v54, 16  ;;  %v510_v41 = vshll.u32 %v4808_v54, 16  ;;  %v490_v44 = vrot.slane %v489_v21, 4 }
  0x47   : > { %v499_v49 = vor.u32 %v498_v29, %v494_v61  ;;  %v1259_v16 = vsel %vm4817_vm7, %v3349_v30, %v1258_v35  ;;  %v1260_v18 = vrot.slane %v1258_v35, 4  ;;  %v481_v50 = vsel %vm4636_vm4, %v476_v31, %v480_v56  ;;  %v4849_v56 = vld [vmem:[%s4589_s24 + $0x78] sm:$0xf]  ;;  %v4865_v31 = vld [vmem:[%s4589_s24 + $0x7c] sm:$0xf] }
  0x48   : > { %v509_v55 = vrot.slane %v507_v40, 4  ;;  %v512_v58 = vrot.slane %v510_v41, 5  ;;  %v516_v59 = vshll.u32 %v4824_v36, 16  ;;  %v4840_v60 = vcombine.low %v471_v12, %v481_v50 }
  0x49   : > { %v495_v63 = vsel %vm4636_vm4, %v490_v44, %v494_v61  ;;  %v500_v17 = vrot.slane %v499_v49, 4  ;;  %v1262_v22 = vsel %vm4817_vm7, %v1260_v18, %v1261_v45  ;;  %v520_v35 = vshrl.u32 %v4824_v36, 16  ;;  %v4870_v49 = vld [vmem:[%s4589_s24 + $0x80] sm:$0x1] }
  0x4a   : > { %5756 = vst [vmem:[#allocation16_spill] sm:$0xff] %v4840_v60  ;;  %v4851_v21 = vcombine.low %v1259_v16, %v1262_v22  ;;  %v513_v29 = vor.u32 %v512_v58, %v509_v55  ;;  %v518_v30 = vrot.slane %v516_v59, 5  ;;  %3818 = vmatprep.mubr.msk.bf16.mxu0 %vm724_vm3, %v4840_v60  ;;  %3683 = vmatmul.mubr.msk.bf16.gmra.mrb[12].mxu1 %vm724_vm3, %v4840_v60  ;;  %v526_v45 = vshll.u32 %v4837_v51, 16  ;;  %v4968_v60 = vld [vmem:[%s4589_s24 + $0x9c] sm:$0xf] }
  0x4b   : > { %v505_v19 = vsel %vm4636_vm4, %v500_v17, %v504_v37  ;;  %v3350_v61 = vrot.slane %v4632_v33, 9  ;;  %v1267_v12 = vrot.slane %v1265_v1, 4  ;;  %v522_v44 = vrot.slane %v520_v35, 4 }
  0x4c   : > { %5757 = vst [vmem:[#allocation17_spill] sm:$0xff] %v4851_v21  ;;  %v4867_v40 = vcombine.low %v495_v63, %v505_v19  ;;  %v514_v41 = vrot.slane %v513_v29, 4  ;;  %v531_v16 = vshrl.u32 %v4849_v56, 16  ;;  %v528_v18 = vrot.slane %v526_v45, 5  ;;  %v4896_v29 = vld [vmem:[%s4589_s24 + $0x84] sm:$0xf] }
  0x4d   : > { %v1266_v37 = vsel %vm4817_vm7, %v3350_v61, %v1265_v1  ;;  %v1269_v50 = vsel %vm4817_vm7, %v1267_v12, %v1268_v2  ;;  %v534_v55 = vshll.u32 %v4849_v56, 16  ;;  %v523_v59 = vor.u32 %v522_v44, %v518_v30 }
  0x4e   : > { %5758 = vst [vmem:[#allocation18_spill] sm:$0xff] %v4867_v40  ;;  %3819 = vmatmul.mubr.msk.bf16.gmra.mrb[12].mxu0 %vm724_vm3, %v4867_v40  ;;  %3686 = vmatprep.mubr.msk.bf16.mxu1 %vm724_vm3, %v4867_v40  ;;  %v519_v58 = vsel %vm4636_vm4, %v514_v41, %v518_v30  ;;  %v4888_v63 = vcombine.low %v1266_v37, %v1269_v50  ;;  %v533_v1 = vrot.slane %v531_v16, 4  ;;  %v540_v2 = vshll.u32 %v4865_v31, 16  ;;  %v4902_v16 = vld [vmem:[%s4589_s24 + $0x88] sm:$0xf] }
  0x4f   : > { %3840 = vmatprep.mubr.msk.bf16.mxu0 %vm724_vm3, %v4851_v21  ;;  %v536_v46 = vrot.slane %v534_v55, 5  ;;  %v544_v17 = vshrl.u32 %v4865_v31, 16  ;;  %v550_v22 = vshll.u32 %v4870_v49, 16  ;;  %v524_v35 = vrot.slane %v523_v59, 4 }
  0x50   : > { %5759 = vst [vmem:[#allocation19_spill] sm:$0xff] %v4888_v63  ;;  %v3351_v30 = vrot.slane %v4659_v57, 9  ;;  %v1272_v19 = vrot.slane %v4664_v62, 5  ;;  %v1275_v45 = vrot.slane %v4672_v4, 5  ;;  %v542_v12 = vrot.slane %v540_v2, 5 }
  0x51   : > { %v537_v61 = vor.u32 %v536_v46, %v533_v1  ;;  %v546_v41 = vrot.slane %v544_v17, 4  ;;  %v552_v44 = vrot.slane %v550_v22, 5  ;;  %v529_v37 = vsel %vm4636_vm4, %v524_v35, %v528_v18  ;;  %v4912_v1 = vld [vmem:[%s4589_s24 + $0x8c] sm:$0x1] }
  0x52   : > { %v1273_v50 = vsel %vm4817_vm7, %v3351_v30, %v1272_v19  ;;  %v1274_v55 = vrot.slane %v1272_v19, 4  ;;  %v555_v59 = vshrl.u32 %v4896_v29, 16  ;;  %v4909_v3 = vcombine.low %v519_v58, %v529_v37 }
  0x53   : > { %v538_v40 = vrot.slane %v537_v61, 4  ;;  %v547_v4 = vor.u32 %v546_v41, %v542_v12  ;;  %v558_v46 = vshll.u32 %v4896_v29, 16  ;;  %v564_v18 = vshll.u32 %v4902_v16, 16  ;;  %v4926_v61 = vld [vmem:[%s4589_s24 + $0x90] sm:$0xf] }
  0x54   : > { %5760 = vst [vmem:[#allocation20_spill] sm:$0xff] %v4909_v3  ;;  %v1276_v2 = vsel %vm4817_vm7, %v1274_v55, %v1275_v45  ;;  %v557_v17 = vrot.slane %v555_v59, 4  ;;  %v568_v22 = vshrl.u32 %v4902_v16, 16  ;;  %3687 = vmatmul.mubr.msk.bf16.gmra.mrb[16].mxu1 %vm724_vm3, %v4909_v3  ;;  %v4931_v45 = vld [vmem:[%s5708_s1 + $0xe] sm:$0x3]  ;;  %v1279_v59 = vrot.slane %v4690_v28, 5 }
  0x55   : > { %v543_v58 = vsel %vm4636_vm4, %v538_v40, %v542_v12  ;;  %v548_v35 = vrot.slane %v547_v4, 4  ;;  %v4923_v30 = vcombine.low %v1273_v50, %v1276_v2  ;;  %v560_v19 = vrot.slane %v558_v46, 5  ;;  %5762 = vst [vmem:[#allocation22_spill] sm:$0xff] %v4931_v45  ;;  %v4945_v46 = vld [vmem:[%s4589_s24 + $0x94] sm:$0xf] }
  0x56   : > { %3841 = vmatmul.mubr.msk.bf16.vlgmr.msra.gmra.mrb[0].mxu0 %vm724_vm3, %v4888_v63  ;;  %v566_v41 = vrot.slane %v564_v18, 5  ;;  %v570_v37 = vrot.slane %v568_v22, 4  ;;  %v574_v40 = vshll.u32 %v4912_v1, 16  ;;  %v3352_v12 = vrot.slane %v4678_v14, 9  ;;  %v4950_v3 = vld [vmem:[%s4589_s24 + $0x98] sm:$0x1] }
  0x57   : > { %5761 = vst [vmem:[#allocation21_spill] sm:$0xff] %v4923_v30  ;;  %3873 = vmatpush3.bf16.msra.mxu0 %v4624_v20  ;;  %v553_v50 = vsel %vm4636_vm4, %v548_v35, %v552_v44  ;;  %3844 = vmatprep.mubr.msk.bf16.mxu0 %vm724_vm3, %v4923_v30  ;;  %v561_v55 = vor.u32 %v560_v19, %v557_v17  ;;  %v1282_v4 = vrot.slane %v4697_v32, 5  ;;  %v579_v20 = vshrl.u32 %v4926_v61, 16 }
  0x58   : > { %v4947_v2 = vcombine.low %v543_v58, %v553_v50  ;;  %v571_v18 = vor.u32 %v570_v37, %v566_v41  ;;  %v576_v22 = vrot.slane %v574_v40, 5  ;;  %4240 = vmatprep.subr.msk.bf16.mxu0 %vm773_vm0, %v4931_v45  ;;  %v1280_v17 = vsel %vm4817_vm7, %v3352_v12, %v1279_v59 }
  0x59   : > { %v562_v44 = vrot.slane %v561_v55, 4  ;;  %v1281_v35 = vrot.slane %v1279_v59, 4  ;;  %v582_v32 = vshll.u32 %v4926_v61, 16  ;;  %v581_v19 = vrot.slane %v579_v20, 4 }
  0x5a   : > { %5763 = vst [vmem:[#allocation23_spill] sm:$0xff] %v4947_v2  ;;  %3690 = vmatprep.mubr.msk.bf16.mxu1 %vm724_vm3, %v4947_v2  ;;  %v572_v58 = vrot.slane %v571_v18, 4  ;;  %v588_v37 = vshll.u32 %v4945_v46, 16  ;;  %v592_v40 = vshrl.u32 %v4945_v46, 16  ;;  %v598_v59 = vshll.u32 %v4950_v3, 16 }
  0x5b   : > { %v567_v50 = vsel %vm4636_vm4, %v562_v44, %v566_v41  ;;  %v1283_v55 = vsel %vm4817_vm7, %v1281_v35, %v1282_v4  ;;  %v584_v12 = vrot.slane %v582_v32, 5  ;;  %v3353_v4 = vrot.slane %v4705_v48, 9 }
  0x5c   : > { %v577_v2 = vsel %vm4636_vm4, %v572_v58, %v576_v22  ;;  %v4972_v18 = vcombine.low %v1280_v17, %v1283_v55  ;;  %v590_v20 = vrot.slane %v588_v37, 5  ;;  %v594_v0 = vrot.slane %v592_v40, 4  ;;  %v4988_v58 = vld [vmem:[%s4589_s24 + $0xa4] sm:$0x1] }
  0x5d   : > { %v4977_v43 = vcombine.low %v567_v50, %v577_v2  ;;  %v585_v41 = vor.u32 %v584_v12, %v581_v19  ;;  %v600_v44 = vrot.slane %v598_v59, 5  ;;  %v1286_v32 = vrot.slane %v4713_v52, 5 }
  0x5e   : > { %5764 = vst [vmem:[#allocation24_spill] sm:$0xff] %v4972_v18  ;;  %3845 = vmatmul.mubr.msk.bf16.gmra.mrb[4].mxu0 %vm724_vm3, %v4972_v18  ;;  %v595_v35 = vor.u32 %v594_v0, %v590_v20  ;;  %v1289_v22 = vrot.slane %v4725_v5, 5  ;;  %v603_v17 = vshrl.u32 %v4968_v60, 16  ;;  %v606_v19 = vshll.u32 %v4968_v60, 16 }
  0x5f   : > { %5765 = vst [vmem:[#allocation25_spill] sm:$0xff] %v4977_v43  ;;  %3691 = vmatmul.mubr.msk.bf16.gmra.mrb[20].mxu1 %vm724_vm3, %v4977_v43  ;;  %v586_v2 = vrot.slane %v585_v41, 4  ;;  %v612_v37 = vshll.u32 %v4975_v7, 16  ;;  %v616_v0 = vshrl.u32 %v4975_v7, 16  ;;  %v1287_v5 = vsel %vm4817_vm7, %v3353_v4, %v1286_v32 }
  0x60   : > { %v596_v40 = vrot.slane %v595_v35, 4  ;;  %v1288_v50 = vrot.slane %v1286_v32, 4  ;;  %v605_v55 = vrot.slane %v603_v17, 4  ;;  %v608_v59 = vrot.slane %v606_v19, 5  ;;  %v5007_v32 = vld [vmem:[%s4589_s24 + $0xac] sm:$0xf] }
  0x61   : > { %v591_v12 = vsel %vm4636_vm4, %v586_v2, %v590_v20  ;;  %v614_v41 = vrot.slane %v612_v37, 5  ;;  %v618_v43 = vrot.slane %v616_v0, 4  ;;  %v622_v35 = vshll.u32 %v4988_v58, 16 }
  0x62   : > { %v601_v53 = vsel %vm4636_vm4, %v596_v40, %v600_v44  ;;  %v1290_v18 = vsel %vm4817_vm7, %v1288_v50, %v1289_v22  ;;  %v3354_v4 = vrot.slane %v4730_v13, 9  ;;  %v609_v2 = vor.u32 %v608_v59, %v605_v55 }
  0x63   : > { %v5009_v17 = vcombine.low %v591_v12, %v601_v53  ;;  %v5011_v20 = vcombine.low %v1287_v5, %v1290_v18  ;;  %v619_v19 = vor.u32 %v618_v43, %v614_v41  ;;  %v624_v37 = vrot.slane %v622_v35, 5  ;;  %v5021_v18 = vld [vmem:[%s4589_s24 + $0xb0] sm:$0x1] }
  0x64   : > { %v1293_v0 = vrot.slane %v4737_v24, 5  ;;  %v1296_v44 = vrot.slane %v4754_v8, 5  ;;  %v627_v22 = vshrl.u32 %v4998_v25, 16  ;;  %v610_v53 = vrot.slane %v609_v2, 4 }
  0x65   : > { %5766 = vst [vmem:[#allocation26_spill] sm:$0xff] %v5009_v17  ;;  %5767 = vst [vmem:[#allocation27_spill] sm:$0xff] %v5011_v20  ;;  %3694 = vmatprep.mubr.msk.bf16.mxu1 %vm724_vm3, %v5009_v17  ;;  %3848 = vmatprep.mubr.msk.bf16.mxu0 %vm724_vm3, %v5011_v20  ;;  %v620_v40 = vrot.slane %v619_v19, 4  ;;  %v630_v43 = vshll.u32 %v4998_v25, 16  ;;  %v636_v5 = vshll.u32 %v5007_v32, 16  ;;  %v640_v12 = vshrl.u32 %v5007_v32, 16 }
  0x66   : > { %v1294_v8 = vsel %vm4817_vm7, %v3354_v4, %v1293_v0  ;;  %v1295_v50 = vrot.slane %v1293_v0, 4  ;;  %v629_v55 = vrot.slane %v627_v22, 4  ;;  %v615_v59 = vsel %vm4636_vm4, %v610_v53, %v614_v41  ;;  %v5033_v17 = vld [vmem:[%s4589_s24 + $0xb4] sm:$0xf]  ;;  %v5045_v53 = vld [vmem:[%s4589_s24 + $0xb8] sm:$0xf] }
  0x67   : > { %v625_v35 = vsel %vm4636_vm4, %v620_v40, %v624_v37  ;;  %v632_v2 = vrot.slane %v630_v43, 5  ;;  %v638_v19 = vrot.slane %v636_v5, 5  ;;  %v642_v0 = vrot.slane %v640_v12, 4 }
  0x68   : > { %v5035_v20 = vcombine.low %v615_v59, %v625_v35  ;;  %v1297_v4 = vsel %vm4817_vm7, %v1295_v50, %v1296_v44  ;;  %v646_v22 = vshll.u32 %v5021_v18, 16  ;;  %v3355_v41 = vrot.slane %v4759_v42, 9  ;;  %v5051_v44 = vld [vmem:[%s4589_s24 + $0xbc] sm:$0x1] }
  0x69   : > { %v5040_v30 = vcombine.low %v1294_v8, %v1297_v4  ;;  %v633_v63 = vor.u32 %v632_v2, %v629_v55  ;;  %v1300_v37 = vrot.slane %v4764_v6, 5  ;;  %v643_v40 = vor.u32 %v642_v0, %v638_v19 }
  0x6a   : > { %5768 = vst [vmem:[#allocation28_spill] sm:$0xff] %v5035_v20  ;;  %3695 = vmatmul.mubr.msk.bf16.gmra.mrb[24].mxu1 %vm724_vm3, %v5035_v20  ;;  %v648_v43 = vrot.slane %v646_v22, 5  ;;  %v1303_v5 = vrot.slane %v4777_v11, 5  ;;  %v651_v50 = vshrl.u32 %v5033_v17, 16  ;;  %v654_v59 = vshll.u32 %v5033_v17, 16 }
  0x6b   : > { %5769 = vst [vmem:[#allocation29_spill] sm:$0xff] %v5040_v30  ;;  %3849 = vmatmul.mubr.msk.bf16.gmra.mrb[8].mxu0 %vm724_vm3, %v5040_v30  ;;  %v634_v8 = vrot.slane %v633_v63, 4  ;;  %v1301_v55 = vsel %vm4817_vm7, %v3355_v41, %v1300_v37  ;;  %v1302_v12 = vrot.slane %v1300_v37, 4  ;;  %v644_v35 = vrot.slane %v643_v40, 4 }
  0x6c   : > { %v653_v2 = vrot.slane %v651_v50, 4  ;;  %v660_v4 = vshll.u32 %v5045_v53, 16  ;;  %v664_v11 = vshrl.u32 %v5045_v53, 16  ;;  %v656_v20 = vrot.slane %v654_v59, 5 }
  0x6d   : > { %v639_v0 = vsel %vm4636_vm4, %v634_v8, %v638_v19  ;;  %v1304_v22 = vsel %vm4817_vm7, %v1302_v12, %v1303_v5  ;;  %v670_v63 = vshll.u32 %v5051_v44, 16  ;;  %v649_v41 = vsel %vm4636_vm4, %v644_v35, %v648_v43 }
  0x6e   : > { %v5068_v37 = vcombine.low %v1301_v55, %v1304_v22  ;;  %v662_v40 = vrot.slane %v660_v4, 5  ;;  %v666_v50 = vrot.slane %v664_v11, 4  ;;  %v5070_v30 = vcombine.low %v639_v0, %v649_v41 }
  0x6f   : > { %v657_v21 = vor.u32 %v656_v20, %v653_v2  ;;  %v672_v45 = vrot.slane %v670_v63, 5  ;;  %v3356_v42 = vrot.slane %v4781_v15, 9  ;;  %v1307_v5 = vrot.slane %v4786_v27, 5 }
  0x70   : > { %3852 = vmatprep.mubr.msk.bf16.mxu0 %vm724_vm3, %v5068_v37  ;;  %v667_v19 = vor.u32 %v666_v50, %v662_v40  ;;  %v1310_v8 = vrot.slane %v4800_v47, 5  ;;  %v3357_v43 = vrot.slane %v4808_v54, 9  ;;  %3698 = vmatprep.mubr.msk.bf16.mxu1 %vm724_vm3, %v5070_v30  ;;  %v3316_v20 = vcombine.low %v4603_v9, %v4606_v10 }
  0x71   : > { %v658_v55 = vrot.slane %v657_v21, 4  ;;  %v1314_v12 = vrot.slane %v4824_v36, 5  ;;  %v1317_v59 = vrot.slane %v4837_v51, 5  ;;  %v1308_v2 = vsel %vm4817_vm7, %v3356_v42, %v1307_v5 }
  0x72   : > { %v668_v35 = vrot.slane %v667_v19, 4  ;;  %v1309_v4 = vrot.slane %v1307_v5, 4  ;;  %v1321_v47 = vrot.slane %v4865_v31, 5  ;;  %v3358_v9 = vrot.slane %v4849_v56, 9 }
  0x73   : > { %v663_v11 = vsel %vm4636_vm4, %v658_v55, %v662_v40  ;;  %v1315_v21 = vsel %vm4817_vm7, %v3357_v43, %v1314_v12  ;;  %v1316_v0 = vrot.slane %v1314_v12, 4  ;;  %v1324_v42 = vrot.slane %v4870_v49, 5 }
  0x74   : > { %v673_v10 = vsel %vm4636_vm4, %v668_v35, %v672_v45  ;;  %v1311_v51 = vsel %vm4817_vm7, %v1309_v4, %v1310_v8  ;;  %v1323_v22 = vrot.slane %v1321_v47, 4  ;;  %v3359_v19 = vrot.slane %v4896_v29, 9 }
  0x75   : > { %v5097_v63 = vcombine.low %v663_v11, %v673_v10  ;;  %v5099_v41 = vcombine.low %v1308_v2, %v1311_v51  ;;  %v1318_v40 = vsel %vm4817_vm7, %v1316_v0, %v1317_v59  ;;  %v1328_v5 = vrot.slane %v4902_v16, 5 }
  0x76   : > { %v5103_v50 = vcombine.low %v1315_v21, %v1318_v40  ;;  %v1331_v49 = vrot.slane %v4912_v1, 5  ;;  %v1322_v45 = vsel %vm4817_vm7, %v3358_v9, %v1321_v47  ;;  %v1325_v8 = vsel %vm4817_vm7, %v1323_v22, %v1324_v42 }
  0x77   : > { %3699 = vmatmul.mubr.msk.bf16.gmra.mrb[28].mxu1 %vm724_vm3, %v5097_v63  ;;  %3853 = vmatmul.mubr.msk.bf16.gmra.mrb[12].mxu0 %vm724_vm3, %v5099_v41  ;;  %v1330_v43 = vrot.slane %v1328_v5, 4  ;;  %v1335_v55 = vrot.slane %v4945_v46, 5  ;;  %v1342_v12 = vrot.slane %v4975_v7, 5  ;;  %v1329_v59 = vsel %vm4817_vm7, %v3359_v19, %v1328_v5 }
  0x78   : > { %3704 = vmatprep.mubr.msk.bf16.mxu1 %vm724_vm3, %v3316_v20  ;;  %3856 = vmatprep.mubr.msk.bf16.mxu0 %vm724_vm3, %v5103_v50  ;;  %v5125_v20 = vcombine.low %v1322_v45, %v1325_v8  ;;  %v3360_v35 = vrot.slane %v4926_v61, 9  ;;  %v1338_v4 = vrot.slane %v4950_v3, 5  ;;  %v5131_v47 = vcombine.low %v4632_v33, %v4645_v39  ;;  %v5143_v3 = vld [vmem:[%s5708_s1 + $0x6] sm:$0x3] }
  0x79   : > { %v1332_v1 = vsel %vm4817_vm7, %v1330_v43, %v1331_v49  ;;  %v1337_v2 = vrot.slane %v1335_v55, 4  ;;  %v3361_v11 = vrot.slane %v4968_v60, 9  ;;  %v1460_v21 = vsel %vm773_vm0, %v4685_v23, 0 }
  0x7a   : > { %v5136_v0 = vcombine.low %v1329_v59, %v1332_v1  ;;  %v1344_v9 = vrot.slane %v1342_v12, 4  ;;  %v1345_v10 = vrot.slane %v4988_v58, 5  ;;  %v1349_v51 = vrot.slane %v5007_v32, 5 }
  0x7b   : > { %v1336_v33 = vsel %vm4817_vm7, %v3360_v35, %v1335_v55  ;;  %v1339_v39 = vsel %vm4817_vm7, %v1337_v2, %v1338_v4  ;;  %v5157_v23 = vcombine.low %v4659_v57, %v4664_v62  ;;  %v1343_v58 = vsel %vm4817_vm7, %v3361_v11, %v1342_v12 }
  0x7c   : > { %v5163_v22 = vcombine.low %v4781_v15, %v4786_v27  ;;  %v1346_v42 = vsel %vm4817_vm7, %v1344_v9, %v1345_v10  ;;  %v3362_v40 = vrot.slane %v4998_v25, 9  ;;  %v1356_v19 = vrot.slane %v5045_v53, 5 }
  0x7d   : > { %v5173_v57 = vcombine.low %v4808_v54, %v4824_v36  ;;  %v5177_v62 = vcombine.low %v1336_v33, %v1339_v39  ;;  %v1351_v15 = vrot.slane %v1349_v51, 4  ;;  %v1352_v27 = vrot.slane %v5021_v18, 5  ;;  %v282_v18 = vld [vmem:[%s4589_s24 + $0xc8] sm:$0x1] }
  0x7e   : > { %v5182_v5 = vcombine.low %v4849_v56, %v4865_v31  ;;  %v5186_v49 = vcombine.low %v4896_v29, %v4902_v16  ;;  %v5190_v54 = vcombine.low %v4926_v61, %v4945_v46  ;;  %v5194_v36 = vcombine.low %v4968_v60, %v4975_v7  ;;  %v5213_v61 = vld [vmem:[%s4589_s24 + $0xc4] sm:$0xf] }
  0x7f   : > { %3705 = vmatmul.mubr.msk.bf16.vlgmr.msra.gmra.mrb[0].mxu1 %vm724_vm3, %v4642_v38  ;;  %3857 = vmatmul.mubr.msk.bf16.gmra.mrb[16].mxu0 %vm724_vm3, %v5125_v20  ;;  %v5198_v45 = vcombine.low %v4998_v25, %v5007_v32  ;;  %v5202_v56 = vcombine.low %v4678_v14, %v4690_v28  ;;  %v5204_v31 = vcombine.low %v1343_v58, %v1346_v42  ;;  %v3363_v16 = vrot.slane %v5033_v17, 9  ;;  %v5770_v42 = vld [vmem:[#allocation12_spill] sm:$0xff] }
  0x80   : > { %3737 = vmatpush3.bf16.msra.mxu1 %v1460_v21  ;;  %3708 = vmatprep.mubr.msk.bf16.mxu1 %vm724_vm3, %v5131_v47  ;;  %v5208_v29 = vcombine.low %v5033_v17, %v5045_v53  ;;  %v1358_v7 = vrot.slane %v1356_v19, 4  ;;  %v1359_v60 = vrot.slane %v5051_v44, 5  ;;  %v1350_v14 = vsel %vm4817_vm7, %v3362_v40, %v1349_v51  ;;  %v5233_v17 = vld [vmem:[%s4589_s24 + $0xc0] sm:$0xf] }
  0x81   : > { %3860 = vmatprep.mubr.msk.bf16.mxu0 %vm724_vm3, %v5136_v0  ;;  %4235 = vmatprep.subr.msk.bf16.mxu1 %vm773_vm0, %v5143_v3  ;;  %v1353_v28 = vsel %vm4817_vm7, %v1351_v15, %v1352_v27  ;;  %v2092_v25 = vrot.slane %v5213_v61, 5  ;;  %v1357_v46 = vsel %vm4817_vm7, %v3363_v16, %v1356_v19  ;;  %v5238_v53 = vcombine.low %v4705_v48, %v4713_v52 }
  0x82   : > { %v1360_v32 = vsel %vm4817_vm7, %v1358_v7, %v1359_v60  ;;  %v5240_v44 = vcombine.low %v1350_v14, %v1353_v28  ;;  %v5244_v8 = vcombine.low %v4730_v13, %v4737_v24  ;;  %v1862_v43 = vshrl.u32 %v5233_v17, 16  ;;  %v3489_v60 = vld [vmem:[%s5708_s1 + $0x10] sm:$0x3]  ;;  %v4329_v14 = vld [vmem:[%s4589_s24 + $0x4] sm:$0xf] }
  0x83   : > { %v1865_v55 = vshll.u32 %v5233_v17, 16  ;;  %v1871_v12 = vshll.u32 %v5213_v61, 16  ;;  %v1875_v59 = vshrl.u32 %v5213_v61, 16  ;;  %v5250_v1 = vcombine.low %v1357_v46, %v1360_v32  ;;  %v4331_v32 = vld [vmem:[%s4589_s24] sm:$0xf] }
  0x84   : > { %v3433_v35 = vrot.slane %v5233_v17, 9  ;;  %v2094_v48 = vrot.slane %v2092_v25, 4  ;;  %v2095_v52 = vrot.slane %v282_v18, 5  ;;  %v1864_v2 = vrot.slane %v1862_v43, 4 }
  0x85   : > { %v1867_v4 = vrot.slane %v1865_v55, 5  ;;  %v1873_v11 = vrot.slane %v1871_v12, 5  ;;  %v1877_v21 = vrot.slane %v1875_v59, 4  ;;  %v1881_v9 = vshll.u32 %v282_v18, 16 }
  0x86   : > { %v2093_v10 = vsel %vm4817_vm7, %v3433_v35, %v2092_v25  ;;  %v2096_v51 = vsel %vm4817_vm7, %v2094_v48, %v2095_v52  ;;  %v5267_v40 = vcombine.low %v5770_v42, %v4764_v6  ;;  %v5771_v6 = vld [vmem:[#allocation22_spill] sm:$0xff]  ;;  %v1251_v28 = vrot.slane %v4329_v14, 5  ;;  %v4330_v25 = vld [vmem:[%s4589_s24 + $0x8] sm:$0x1]  ;;  %v5773_v52 = vld [vmem:[#allocation19_spill] sm:$0xff] }
  0x87   : > { %3709 = vmatmul.mubr.msk.bf16.gmra.mrb[4].mxu1 %vm724_vm3, %v5157_v23  ;;  %3861 = vmatmul.mubr.msk.bf16.gmra.mrb[20].mxu0 %vm724_vm3, %v5177_v62  ;;  %v1868_v13 = vor.u32 %v1867_v4, %v1864_v2  ;;  %v1878_v24 = vor.u32 %v1877_v21, %v1873_v11  ;;  %v1883_v58 = vrot.slane %v1881_v9, 5  ;;  %v5269_v19 = vcombine.low %v2093_v10, %v2096_v51  ;;  %v5772_v48 = vld [vmem:[#allocation17_spill] sm:$0xff]  ;;  %v5775_v4 = vld [vmem:[#allocation24_spill] sm:$0xff]  ;;  %v5776_v21 = vld [vmem:[#allocation27_spill] sm:$0xff] }
  0x88   : > { %3712 = vmatprep.mubr.msk.bf16.mxu1 %vm724_vm3, %v5202_v56  ;;  %3864 = vmatprep.mubr.msk.bf16.mxu0 %vm724_vm3, %v5204_v31  ;;  %v2540_v7 = vsel %vm773_vm0, %v5771_v6, 0  ;;  %v1254_v46 = vrot.slane %v4330_v25, 5  ;;  %v3348_v18 = vrot.slane %v4331_v32, 9  ;;  %v1253_v43 = vrot.slane %v1251_v28, 4  ;;  %v4332_v2 = vld [vmem:[%s5708_s1 + $0x8] sm:$0x3] }
  0x89   : > { %v1869_v33 = vrot.slane %v1868_v13, 4  ;;  %v1879_v39 = vrot.slane %v1878_v24, 4  ;;  %v1666_v35 = vsel %vm773_vm0, %v5143_v3, 0  ;;  %v5774_v3 = vld [vmem:[#allocation21_spill] sm:$0xff]  ;;  %v5364_v24 = vld [vmem:[%s4589_s24 + $0xcc] sm:$0xf] }
  0x8a   : > { %v1252_v55 = vsel %vm4817_vm7, %v3348_v18, %v1251_v28  ;;  %v1255_v12 = vsel %vm4817_vm7, %v1253_v43, %v1254_v46  ;;  %v5777_v13 = vld [vmem:[#allocation29_spill] sm:$0xff]  ;;  %v5367_v9 = vld [vmem:[%s4589_s24 + $0xd0] sm:$0xf]  ;;  %v2752_v10 = vsel %vm773_vm0, %v3489_v60, 0  ;;  %v5779_v51 = vld [vmem:[#allocation11_spill] sm:$0xff]  ;;  %v2511_v14 = vshll.u32 %v5364_v24, 16 }
  0x8b   : > { %v1874_v15 = vsel %vm4636_vm4, %v1869_v33, %v1873_v11  ;;  %v1884_v27 = vsel %vm4636_vm4, %v1879_v39, %v1883_v58  ;;  %v3365_v59 = vcombine.low %v1252_v55, %v1255_v12  ;;  %v5353_v11 = vcombine.low %v5233_v17, %v5213_v61  ;;  %v5778_v17 = vld [vmem:[#allocation10_spill] sm:$0xff]  ;;  %v5780_v33 = vld [vmem:[#allocation13_spill] sm:$0xff]  ;;  %v5782_v58 = vld [vmem:[#allocation15_spill] sm:$0xff] }
  0x8c   : > { %v5275_v16 = vcombine.low %v1874_v15, %v1884_v27  ;;  %v3453_v61 = vcombine.low %v5364_v24, %v5367_v9  ;;  %v5781_v39 = vld [vmem:[#allocation14_spill] sm:$0xff]  ;;  %v5783_v42 = vld [vmem:[#allocation16_spill] sm:$0xff]  ;;  %v5786_v6 = vld [vmem:[#allocation23_spill] sm:$0xff]  ;;  %v2521_v28 = vshrl.u32 %v5367_v9, 16  ;;  %v2513_v32 = vrot.slane %v2511_v14, 5 }
  0x8d   : > { %v5784_v15 = vld [vmem:[#allocation18_spill] sm:$0xff]  ;;  %v5785_v27 = vld [vmem:[#allocation20_spill] sm:$0xff]  ;;  %v5788_v25 = vld [vmem:[#allocation9_spill] sm:$0xff]  ;;  %v2738_v34 = vrot.slane %v5367_v9, 5 }
  0x8e   : > { %v5789_v46 = vld [vmem:[#allocation26_spill] sm:$0xff]  ;;  %v2523_v43 = vrot.slane %v2521_v28, 4  ;;  %v285_v55 = vld [vmem:[%s4589_s24 + $0xd4] sm:$0x1]  ;;  %v5790_v12 = vld [vmem:[#allocation28_spill] sm:$0xff]  ;;  %s5521_s24 = scalar_lea.vmem [#allocation4], %s5518_s14 }
  0x8f   : > { %3713 = vmatmul.mubr.msk.bf16.gmra.mrb[8].mxu1 %vm724_vm3, %v5238_v53  ;;  %3865 = vmatmul.mubr.msk.bf16.gmra.mrb[24].mxu0 %vm724_vm3, %v5240_v44 }
  0x90   : > { %3716 = vmatprep.mubr.msk.bf16.mxu1 %vm724_vm3, %v5244_v8  ;;  %3868 = vmatprep.mubr.msk.bf16.mxu0 %vm724_vm3, %v5250_v1 }
  0x97   : > { %3717 = vmatmul.mubr.msk.bf16.gmra.mrb[12].mxu1 %vm724_vm3, %v5267_v40  ;;  %3869 = vmatmul.mubr.msk.bf16.gmra.mrb[28].mxu0 %vm724_vm3, %v5269_v19 }
  0x98   : > { %3720 = vmatprep.mubr.msk.bf16.mxu1 %vm724_vm3, %v5163_v22  ;;  %3874 = vmatprep.mubr.msk.bf16.mxu0 %vm724_vm3, %v5131_v47 }
  0x9f   : > { %3721 = vmatmul.mubr.msk.bf16.gmra.mrb[16].mxu1 %vm724_vm3, %v5173_v57  ;;  %3875 = vmatmul.mubr.msk.bf16.vlgmr.msra.gmra.mrb[0].mxu0 %vm724_vm3, %v5157_v23 }
  0xa0   : > { %3907 = vmatpush3.bf16.msra.mxu0 %v2540_v7  ;;  %3724 = vmatprep.mubr.msk.bf16.mxu1 %vm724_vm3, %v5182_v5  ;;  %v5787_v7 = vld [vmem:[#allocation25_spill] sm:$0xff] }
  0xa1   : > { %3878 = vmatprep.mubr.msk.bf16.mxu0 %vm724_vm3, %v5202_v56  ;;  %4241 = vmatprep.subr.msk.bf16.mxu0 %vm773_vm0, %v3489_v60  ;;  %v2508_v60 = vshrl.u32 %v5364_v24, 16 }
  0xa7   : > { %3725 = vmatmul.mubr.msk.bf16.gmra.mrb[20].mxu1 %vm724_vm3, %v5186_v49  ;;  %3879 = vmatmul.mubr.msk.bf16.gmra.mrb[4].mxu0 %vm724_vm3, %v5238_v53 }
  0xa8   : > { %3728 = vmatprep.mubr.msk.bf16.mxu1 %vm724_vm3, %v5190_v54  ;;  %3882 = vmatprep.mubr.msk.bf16.mxu0 %vm724_vm3, %v5244_v8 }
  0xaf   : > { %3729 = vmatmul.mubr.msk.bf16.gmra.mrb[24].mxu1 %vm724_vm3, %v5194_v36  ;;  %3883 = vmatmul.mubr.msk.bf16.gmra.mrb[8].mxu0 %vm724_vm3, %v5267_v40 }
  0xb0   : > { %3732 = vmatprep.mubr.msk.bf16.mxu1 %vm724_vm3, %v5198_v45  ;;  %3886 = vmatprep.mubr.msk.bf16.mxu0 %vm724_vm3, %v5163_v22 }
  0xb7   : > { %3733 = vmatmul.mubr.msk.bf16.gmra.mrb[28].mxu1 %vm724_vm3, %v5208_v29  ;;  %3887 = vmatmul.mubr.msk.bf16.gmra.mrb[12].mxu0 %vm724_vm3, %v5173_v57 }
  0xb8   : > { %3738 = vmatprep.mubr.msk.bf16.mxu1 %vm724_vm3, %v3365_v59  ;;  %3890 = vmatprep.mubr.msk.bf16.mxu0 %vm724_vm3, %v5182_v5 }
  0xbf   : > { %3739 = vmatmul.mubr.msk.bf16.vlgmr.msra.gmra.mrb[0].mxu1 %vm724_vm3, %v5772_v48  ;;  %3891 = vmatmul.mubr.msk.bf16.gmra.mrb[16].mxu0 %vm724_vm3, %v5186_v49 }
  0xc0   : > { %3771 = vmatpush3.bf16.msra.mxu1 %v1666_v35  ;;  %3742 = vmatprep.mubr.msk.bf16.mxu1 %vm724_vm3, %v5773_v52  ;;  %v2527_v35 = vshll.u32 %v285_v55, 16 }
  0xc1   : > { %3894 = vmatprep.mubr.msk.bf16.mxu0 %vm724_vm3, %v5190_v54  ;;  %4237 = vmatprep.subr.msk.bf16.mxu1 %vm773_vm0, %v4332_v2 }
  0xc7   : > { %3743 = vmatmul.mubr.msk.bf16.gmra.mrb[4].mxu1 %vm724_vm3, %v5774_v3  ;;  %3895 = vmatmul.mubr.msk.bf16.gmra.mrb[20].mxu0 %vm724_vm3, %v5194_v36 }
  0xc8   : > { %3746 = vmatprep.mubr.msk.bf16.mxu1 %vm724_vm3, %v5775_v4  ;;  %3898 = vmatprep.mubr.msk.bf16.mxu0 %vm724_vm3, %v5198_v45 }
  0xcf   : > { %3747 = vmatmul.mubr.msk.bf16.gmra.mrb[8].mxu1 %vm724_vm3, %v5776_v21  ;;  %3899 = vmatmul.mubr.msk.bf16.gmra.mrb[24].mxu0 %vm724_vm3, %v5208_v29 }
  0xd0   : > { %3750 = vmatprep.mubr.msk.bf16.mxu1 %vm724_vm3, %v5777_v13  ;;  %3902 = vmatprep.mubr.msk.bf16.mxu0 %vm724_vm3, %v5353_v11 }
  0xd7   : > { %3751 = vmatmul.mubr.msk.bf16.gmra.mrb[12].mxu1 %vm724_vm3, %v5068_v37  ;;  %3903 = vmatmul.mubr.msk.bf16.gmra.mrb[28].mxu0 %vm724_vm3, %v3453_v61  ;;  %v2529_v61 = vrot.slane %v2527_v35, 5 }
  0xd8   : > { %3754 = vmatprep.mubr.msk.bf16.mxu1 %vm724_vm3, %v5099_v41  ;;  %3908 = vmatprep.mubr.msk.bf16.mxu0 %vm724_vm3, %v5778_v17 }
  0xdf   : > { %3755 = vmatmul.mubr.msk.bf16.gmra.mrb[16].mxu1 %vm724_vm3, %v5103_v50  ;;  %3909 = vmatmul.mubr.msk.bf16.vlgmr.msra.gmra.mrb[0].mxu0 %vm724_vm3, %v5779_v51 }
  0xe0   : > { %3941 = vmatpush3.bf16.msra.mxu0 %v2752_v10  ;;  %3758 = vmatprep.mubr.msk.bf16.mxu1 %vm724_vm3, %v5125_v20 }
  0xe1   : > { %3912 = vmatprep.mubr.msk.bf16.mxu0 %vm724_vm3, %v5780_v33 }
  0xe7   : > { %3759 = vmatmul.mubr.msk.bf16.gmra.mrb[20].mxu1 %vm724_vm3, %v5136_v0  ;;  %3913 = vmatmul.mubr.msk.bf16.gmra.mrb[4].mxu0 %vm724_vm3, %v5781_v39 }
  0xe8   : > { %3762 = vmatprep.mubr.msk.bf16.mxu1 %vm724_vm3, %v5177_v62  ;;  %3916 = vmatprep.mubr.msk.bf16.mxu0 %vm724_vm3, %v5782_v58 }
  0xef   : > { %3763 = vmatmul.mubr.msk.bf16.gmra.mrb[24].mxu1 %vm724_vm3, %v5204_v31  ;;  %3917 = vmatmul.mubr.msk.bf16.gmra.mrb[8].mxu0 %vm724_vm3, %v5783_v42 }
  0xf0   : > { %3766 = vmatprep.mubr.msk.bf16.mxu1 %vm724_vm3, %v5240_v44  ;;  %3920 = vmatprep.mubr.msk.bf16.mxu0 %vm724_vm3, %v5784_v15 }
  0xf7   : > { %3767 = vmatmul.mubr.msk.bf16.gmra.mrb[28].mxu1 %vm724_vm3, %v5250_v1  ;;  %3921 = vmatmul.mubr.msk.bf16.gmra.mrb[12].mxu0 %vm724_vm3, %v5785_v27 }
  0xf8   : > { %3772 = vmatprep.mubr.msk.bf16.mxu1 %vm724_vm3, %v4642_v38  ;;  %3924 = vmatprep.mubr.msk.bf16.mxu0 %vm724_vm3, %v5786_v6  ;;  %v2517_v38 = vshll.u32 %v5367_v9, 16 }
  0xfa   : > { %v2519_v18 = vrot.slane %v2517_v38, 5 }
  0xfc   : > { %v2524_v59 = vor.u32 %v2523_v43, %v2519_v18 }
  0xfe   : > { %v2525_v2 = vrot.slane %v2524_v59, 4 }
  0xff   : > { %3773 = vmatmul.mubr.msk.bf16.vlgmr.msra.gmra.mrb[0].mxu1 %vm724_vm3, %v5131_v47  ;;  %3925 = vmatmul.mubr.msk.bf16.gmra.mrb[16].mxu0 %vm724_vm3, %v5787_v7  ;;  %v2510_v47 = vrot.slane %v2508_v60, 4 }
 0x100   : > { %3975 = vmatpush3.bf16.msra.mxu1 %v5788_v25  ;;  %3776 = vmatprep.mubr.msk.bf16.mxu1 %vm724_vm3, %v5157_v23 }
 0x101   : > { %3928 = vmatprep.mubr.msk.bf16.mxu0 %vm724_vm3, %v5789_v46  ;;  %v2514_v23 = vor.u32 %v2513_v32, %v2510_v47 }
 0x103   : > { %v2515_v48 = vrot.slane %v2514_v23, 4 }
 0x107   : > { %3777 = vmatmul.mubr.msk.bf16.gmra.mrb[4].mxu1 %vm724_vm3, %v5202_v56  ;;  %3929 = vmatmul.mubr.msk.bf16.gmra.mrb[20].mxu0 %vm724_vm3, %v5790_v12  ;;  %v2520_v56 = vsel %vm4636_vm4, %v2515_v48, %v2519_v18 }
 0x108   : > { %3780 = vmatprep.mubr.msk.bf16.mxu1 %vm724_vm3, %v5238_v53  ;;  %3932 = vmatprep.mubr.msk.bf16.mxu0 %vm724_vm3, %v5070_v30  ;;  %v2530_v53 = vsel %vm4636_vm4, %v2525_v2, %v2529_v61 }
 0x109   : > { %v3471_v17 = vcombine.low %v2520_v56, %v2530_v53 }
 0x10f   : > { %3781 = vmatmul.mubr.msk.bf16.gmra.mrb[8].mxu1 %vm724_vm3, %v5244_v8  ;;  %3933 = vmatmul.mubr.msk.bf16.gmra.mrb[24].mxu0 %vm724_vm3, %v5097_v63 }
 0x110   : > { %3784 = vmatprep.mubr.msk.bf16.mxu1 %vm724_vm3, %v5267_v40  ;;  %3936 = vmatprep.mubr.msk.bf16.mxu0 %vm724_vm3, %v5275_v16 }
 0x117   : > { %3785 = vmatmul.mubr.msk.bf16.gmra.mrb[12].mxu1 %vm724_vm3, %v5163_v22  ;;  %3937 = vmatmul.mubr.msk.bf16.gmra.mrb[28].mxu0 %vm724_vm3, %v3471_v17 }
 0x118   : > { %3788 = vmatprep.mubr.msk.bf16.mxu1 %vm724_vm3, %v5173_v57  ;;  %3942 = vmatprep.mubr.msk.bf16.mxu0 %vm724_vm3, %v5773_v52 }
 0x11f   : > { %3789 = vmatmul.mubr.msk.bf16.gmra.mrb[16].mxu1 %vm724_vm3, %v5182_v5  ;;  %3943 = vmatmul.mubr.msk.bf16.vlgmr.msra.gmra.mrb[0].mxu0 %vm724_vm3, %v5774_v3 }
 0x120   : > { %3792 = vmatprep.mubr.msk.bf16.mxu1 %vm724_vm3, %v5186_v49  ;;  %3946 = vmatprep.mubr.msk.bf16.mxu0 %vm724_vm3, %v5775_v4 }
 0x127   : > { %3793 = vmatmul.mubr.msk.bf16.gmra.mrb[20].mxu1 %vm724_vm3, %v5190_v54  ;;  %3947 = vmatmul.mubr.msk.bf16.gmra.mrb[4].mxu0 %vm724_vm3, %v5776_v21 }
 0x128   : > { %3796 = vmatprep.mubr.msk.bf16.mxu1 %vm724_vm3, %v5194_v36  ;;  %3950 = vmatprep.mubr.msk.bf16.mxu0 %vm724_vm3, %v5777_v13 }
 0x12f   : > { %3797 = vmatmul.mubr.msk.bf16.gmra.mrb[24].mxu1 %vm724_vm3, %v5198_v45  ;;  %3951 = vmatmul.mubr.msk.bf16.gmra.mrb[8].mxu0 %vm724_vm3, %v5068_v37  ;;  %v3488_v37 = vrot.slane %v5364_v24, 9 }
 0x130   : > { %3800 = vmatprep.mubr.msk.bf16.mxu1 %vm724_vm3, %v5208_v29  ;;  %3954 = vmatprep.mubr.msk.bf16.mxu0 %vm724_vm3, %v5099_v41  ;;  %v2740_v41 = vrot.slane %v2738_v34, 4 }
 0x137   : > { %3801 = vmatmul.mubr.msk.bf16.gmra.mrb[28].mxu1 %vm724_vm3, %v5353_v11  ;;  %3955 = vmatmul.mubr.msk.bf16.gmra.mrb[12].mxu0 %vm724_vm3, %v5103_v50  ;;  %v2741_v50 = vrot.slane %v285_v55, 5 }
 0x138   : > { %3822 = vmatprep.mubr.msk.bf16.mxu1 %vm724_vm3, %v5785_v27  ;;  %3958 = vmatprep.mubr.msk.bf16.mxu0 %vm724_vm3, %v5125_v20  ;;  %v2739_v20 = vsel %vm4817_vm7, %v3488_v37, %v2738_v34 }
 0x13f   : > { %3823 = vmatmul.mubr.msk.bf16.vlgmr.msra.gmra.mrb[16].mxu1 %vm724_vm3, %v5786_v6  ;;  %3959 = vmatmul.mubr.msk.bf16.gmra.mrb[16].mxu0 %vm724_vm3, %v5136_v0  ;;  %v2742_v0 = vsel %vm4817_vm7, %v2740_v41, %v2741_v50 }
 0x140   : > { %3826 = vmatprep.mubr.msk.bf16.mxu1 %vm724_vm3, %v5787_v7  ;;  %3962 = vmatprep.mubr.msk.bf16.mxu0 %vm724_vm3, %v5177_v62  ;;  %v3490_v22 = vcombine.low %v2739_v20, %v2742_v0 }
 0x147   : > { %3827 = vmatmul.mubr.msk.bf16.gmra.mrb[20].mxu1 %vm724_vm3, %v5789_v46  ;;  %3963 = vmatmul.mubr.msk.bf16.gmra.mrb[20].mxu0 %vm724_vm3, %v5204_v31 }
 0x148   : > { %3830 = vmatprep.mubr.msk.bf16.mxu1 %vm724_vm3, %v5790_v12  ;;  %3966 = vmatprep.mubr.msk.bf16.mxu0 %vm724_vm3, %v5240_v44 }
 0x14f   : > { %3831 = vmatmul.mubr.msk.bf16.gmra.mrb[24].mxu1 %vm724_vm3, %v5070_v30  ;;  %3967 = vmatmul.mubr.msk.bf16.gmra.mrb[24].mxu0 %vm724_vm3, %v5250_v1  ;;  %v4473_v30 = vmov 0.0  }
 0x150   : > { %3834 = vmatprep.mubr.msk.bf16.mxu1 %vm724_vm3, %v5097_v63  ;;  %3970 = vmatprep.mubr.msk.bf16.mxu0 %vm724_vm3, %v5269_v19  ;;  %2983 = vst [vmem:[%s5521_s24] sm:$0x1] %v4473_v30  ;;  %2984 = vst [vmem:[%s5525_s26] sm:$0x1] %v4473_v30 }
 0x157   : > { %3835 = vmatmul.mubr.msk.bf16.gmra.mrb[28].mxu1 %vm724_vm3, %v5275_v16  ;;  %3971 = vmatmul.mubr.msk.bf16.gmra.mrb[28].mxu0 %vm724_vm3, %v3490_v22 }
 0x1d2   : > { %v3774_v26 = vpop.f32.mrb[0].mxu1 }
 0x1d3   : > { %v1702_v63 = vpop.f32.mrb[1].mxu1 }
 0x1d4   : > { %v3775_v57 = vpop.f32.mrb[2].mxu1 }
 0x1d5   : > { %v1705_v62 = vpop.f32.mrb[3].mxu1 }
 0x1da   : > { %v3778_v5 = vpop.f32.mrb[4].mxu1 }
 0x1db   : > { %v1718_v49 = vpop.f32.mrb[5].mxu1 }
 0x1dc   : > { %v3779_v54 = vpop.f32.mrb[6].mxu1 }
 0x1dd   : > { %v1721_v36 = vpop.f32.mrb[7].mxu1 }
 0x1e2   : > { %v3782_v45 = vpop.f32.mrb[8].mxu1 }
 0x1e3   : > { %v1734_v31 = vpop.f32.mrb[9].mxu1 }
 0x1e4   : > { %v3783_v29 = vpop.f32.mrb[10].mxu1 }
 0x1e5   : > { %v5528_v44 = vpop.f32.mrb[11].mxu1 }
 0x1ea   : > { %v5530_v8 = vpop.f32.mrb[12].mxu1 }
 0x1eb   : > { %v5532_v1 = vpop.f32.mrb[13].mxu1 }
 0x1ec   : > { %v5534_v40 = vpop.f32.mrb[14].mxu1 }
 0x1ed   : > { %v5536_v19 = vpop.f32.mrb[15].mxu1 }
 0x1f2   : > { %v3944_v16 = vpop.f32.mrb[0].mxu0 }
 0x1f3   : > { %v3976_v52 = vadd.f32 %v3944_v16, %v3774_v26  ;;  %v2788_v3 = vpop.f32.mrb[1].mxu0 }
 0x1f4   : > { %v3977_v4 = vadd.f32 %v2788_v3, %v1702_v63  ;;  %v3945_v11 = vpop.f32.mrb[2].mxu0 }
 0x1f5   : > { %2949 = vst [vmem:[%s5539_s30 + $0x10] sm:$0xff] %v3976_v52  ;;  %v3978_v21 = vadd.f32 %v3945_v11, %v3775_v57  ;;  %v2791_v13 = vpop.f32.mrb[3].mxu0  ;;  %v3028_v33 = vmul.f32 %v3976_v52, %v3976_v52 }
 0x1f6   : > { %2947 = vst [vmem:[%s5539_s30] sm:$0xff] %v3977_v4  ;;  %v3979_v24 = vadd.f32 %v2791_v13, %v1705_v62  ;;  %v3026_v9 = vmul.f32 %v3977_v4, %v3977_v4 }
 0x1f7   : > { %2950 = vst [vmem:[%s5539_s30 + $0x18] sm:$0xff] %v3978_v21  ;;  %v3029_v6 = vmul.f32 %v3978_v21, %v3978_v21 }
 0x1f8   : > { %2948 = vst [vmem:[%s5539_s30 + $0x8] sm:$0xff] %v3979_v24  ;;  %v2986_v10 = vadd.f32 %v3979_v24, %v3977_v4  ;;  %v3027_v51 = vmul.f32 %v3979_v24, %v3979_v24 }
 0x1fa   : > { %v2987_v39 = vadd.f32 %v3976_v52, %v2986_v10  ;;  %v3058_v58 = vadd.f32 %v3027_v51, %v3026_v9  ;;  %v3948_v42 = vpop.f32.mrb[4].mxu0 }
 0x1fb   : > { %v3980_v15 = vadd.f32 %v3948_v42, %v3778_v5  ;;  %v2804_v27 = vpop.f32.mrb[5].mxu0 }
 0x1fc   : > { %v3059_v7 = vadd.f32 %v3058_v58, %v3028_v33  ;;  %v3981_v60 = vadd.f32 %v2804_v27, %v1718_v49  ;;  %v2988_v14 = vadd.f32 %v3978_v21, %v2987_v39  ;;  %v3949_v28 = vpop.f32.mrb[6].mxu0 }
 0x1fd   : > { %2953 = vst [vmem:[%s5539_s30 + $0x30] sm:$0xff] %v3980_v15  ;;  %v3982_v25 = vadd.f32 %v3949_v28, %v3779_v54  ;;  %v2807_v38 = vpop.f32.mrb[7].mxu0  ;;  %v3032_v23 = vmul.f32 %v3980_v15, %v3980_v15 }
 0x1fe   : > { %2951 = vst [vmem:[%s5539_s30 + $0x20] sm:$0xff] %v3981_v60  ;;  %v2989_v46 = vadd.f32 %v3981_v60, %v2988_v14  ;;  %v3030_v47 = vmul.f32 %v3981_v60, %v3981_v60  ;;  %v3060_v32 = vadd.f32 %v3059_v7, %v3029_v6  ;;  %v3983_v18 = vadd.f32 %v2807_v38, %v1721_v36 }
 0x1ff   : > { %2954 = vst [vmem:[%s5539_s30 + $0x38] sm:$0xff] %v3982_v25  ;;  %v3033_v56 = vmul.f32 %v3982_v25, %v3982_v25 }
 0x200   : > { %v3061_v43 = vadd.f32 %v3060_v32, %v3030_v47  ;;  %2952 = vst [vmem:[%s5539_s30 + $0x28] sm:$0xff] %v3983_v18  ;;  %v2990_v55 = vadd.f32 %v3983_v18, %v2989_v46  ;;  %v3031_v12 = vmul.f32 %v3983_v18, %v3983_v18 }
 0x202   : > { %v2991_v59 = vadd.f32 %v3980_v15, %v2990_v55  ;;  %v3062_v35 = vadd.f32 %v3061_v43, %v3031_v12  ;;  %v3952_v48 = vpop.f32.mrb[8].mxu0 }
 0x203   : > { %v3984_v2 = vadd.f32 %v3952_v48, %v3782_v45  ;;  %v2820_v61 = vpop.f32.mrb[9].mxu0 }
 0x204   : > { %v3063_v53 = vadd.f32 %v3062_v35, %v3032_v23  ;;  %v3985_v17 = vadd.f32 %v2820_v61, %v1734_v31  ;;  %v2992_v34 = vadd.f32 %v3982_v25, %v2991_v59  ;;  %v3953_v37 = vpop.f32.mrb[10].mxu0 }
 0x205   : > { %2957 = vst [vmem:[%s5539_s30 + $0x50] sm:$0xff] %v3984_v2  ;;  %v3986_v41 = vadd.f32 %v3953_v37, %v3783_v29  ;;  %v2823_v50 = vpop.f32.mrb[11].mxu0  ;;  %v3036_v62 = vmul.f32 %v3984_v2, %v3984_v2 }
 0x206   : > { %2955 = vst [vmem:[%s5539_s30 + $0x40] sm:$0xff] %v3985_v17  ;;  %v2993_v20 = vadd.f32 %v3985_v17, %v2992_v34  ;;  %v3034_v0 = vmul.f32 %v3985_v17, %v3985_v17  ;;  %v3064_v22 = vadd.f32 %v3063_v53, %v3033_v56  ;;  %v3987_v30 = vadd.f32 %v2823_v50, %v5528_v44 }
 0x207   : > { %2958 = vst [vmem:[%s5539_s30 + $0x58] sm:$0xff] %v3986_v41  ;;  %v3037_v31 = vmul.f32 %v3986_v41, %v3986_v41 }
 0x208   : > { %v3065_v26 = vadd.f32 %v3064_v22, %v3034_v0  ;;  %2956 = vst [vmem:[%s5539_s30 + $0x48] sm:$0xff] %v3987_v30  ;;  %v2994_v63 = vadd.f32 %v3987_v30, %v2993_v20  ;;  %v3035_v57 = vmul.f32 %v3987_v30, %v3987_v30 }
 0x20a   : > { %v2995_v5 = vadd.f32 %v3984_v2, %v2994_v63  ;;  %v3066_v49 = vadd.f32 %v3065_v26, %v3035_v57  ;;  %v3956_v54 = vpop.f32.mrb[12].mxu0 }
 0x20b   : > { %v3988_v36 = vadd.f32 %v3956_v54, %v5530_v8  ;;  %v2836_v45 = vpop.f32.mrb[13].mxu0 }
 0x20c   : > { %v3067_v29 = vadd.f32 %v3066_v49, %v3036_v62  ;;  %v3989_v44 = vadd.f32 %v2836_v45, %v5532_v1  ;;  %v2996_v16 = vadd.f32 %v3986_v41, %v2995_v5  ;;  %v3957_v52 = vpop.f32.mrb[14].mxu0 }
 0x20d   : > { %2961 = vst [vmem:[%s5539_s30 + $0x70] sm:$0xff] %v3988_v36  ;;  %v3990_v3 = vadd.f32 %v3957_v52, %v5534_v40  ;;  %v2839_v4 = vpop.f32.mrb[15].mxu0  ;;  %v3040_v51 = vmul.f32 %v3988_v36, %v3988_v36 }
 0x20e   : > { %2959 = vst [vmem:[%s5539_s30 + $0x60] sm:$0xff] %v3989_v44  ;;  %v2997_v11 = vadd.f32 %v3989_v44, %v2996_v16  ;;  %v3038_v21 = vmul.f32 %v3989_v44, %v3989_v44  ;;  %v3068_v13 = vadd.f32 %v3067_v29, %v3037_v31  ;;  %v3991_v24 = vadd.f32 %v2839_v4, %v5536_v19 }
 0x20f   : > { %2962 = vst [vmem:[%s5539_s30 + $0x78] sm:$0xff] %v3990_v3  ;;  %v3041_v27 = vmul.f32 %v3990_v3, %v3990_v3 }
 0x210   : > { %v3069_v8 = vadd.f32 %v3068_v13, %v3038_v21  ;;  %2960 = vst [vmem:[%s5539_s30 + $0x68] sm:$0xff] %v3991_v24  ;;  %v2998_v9 = vadd.f32 %v3991_v24, %v2997_v11  ;;  %v3039_v10 = vmul.f32 %v3991_v24, %v3991_v24 }
 0x212   : > { %v2999_v1 = vadd.f32 %v3988_v36, %v2998_v9  ;;  %v3070_v33 = vadd.f32 %v3069_v8, %v3039_v10  ;;  %v3824_v39 = vpop.f32.mrb[16].mxu1  ;;  %v3960_v58 = vpop.f32.mrb[16].mxu0 }
 0x213   : > { %v3992_v40 = vadd.f32 %v3960_v58, %v3824_v39  ;;  %v1994_v42 = vpop.f32.mrb[17].mxu1  ;;  %v2852_v15 = vpop.f32.mrb[17].mxu0 }
 0x214   : > { %v3071_v6 = vadd.f32 %v3070_v33, %v3040_v51  ;;  %v3993_v19 = vadd.f32 %v2852_v15, %v1994_v42  ;;  %v3000_v7 = vadd.f32 %v3990_v3, %v2999_v1  ;;  %v3825_v60 = vpop.f32.mrb[18].mxu1  ;;  %v3961_v14 = vpop.f32.mrb[18].mxu0 }
 0x215   : > { %2965 = vst [vmem:[%s5539_s30 + $0x90] sm:$0xff] %v3992_v40  ;;  %v3994_v28 = vadd.f32 %v3961_v14, %v3825_v60  ;;  %v1997_v25 = vpop.f32.mrb[19].mxu1  ;;  %v2855_v38 = vpop.f32.mrb[19].mxu0  ;;  %v3044_v23 = vmul.f32 %v3992_v40, %v3992_v40 }
 0x216   : > { %2963 = vst [vmem:[%s5539_s30 + $0x80] sm:$0xff] %v3993_v19  ;;  %v3001_v46 = vadd.f32 %v3993_v19, %v3000_v7  ;;  %v3042_v47 = vmul.f32 %v3993_v19, %v3993_v19  ;;  %v3072_v32 = vadd.f32 %v3071_v6, %v3041_v27  ;;  %v3995_v18 = vadd.f32 %v2855_v38, %v1997_v25 }
 0x217   : > { %2966 = vst [vmem:[%s5539_s30 + $0x98] sm:$0xff] %v3994_v28  ;;  %v3045_v17 = vmul.f32 %v3994_v28, %v3994_v28 }
 0x218   : > { %v3073_v43 = vadd.f32 %v3072_v32, %v3042_v47  ;;  %2964 = vst [vmem:[%s5539_s30 + $0x88] sm:$0xff] %v3995_v18  ;;  %v3002_v55 = vadd.f32 %v3995_v18, %v3001_v46  ;;  %v3043_v12 = vmul.f32 %v3995_v18, %v3995_v18 }
 0x21a   : > { %v3003_v59 = vadd.f32 %v3992_v40, %v3002_v55  ;;  %v3074_v35 = vadd.f32 %v3073_v43, %v3043_v12  ;;  %v3828_v48 = vpop.f32.mrb[20].mxu1  ;;  %v3964_v2 = vpop.f32.mrb[20].mxu0 }
 0x21b   : > { %v3996_v61 = vadd.f32 %v3964_v2, %v3828_v48  ;;  %v2010_v56 = vpop.f32.mrb[21].mxu1  ;;  %v2868_v53 = vpop.f32.mrb[21].mxu0 }
 0x21c   : > { %v3075_v34 = vadd.f32 %v3074_v35, %v3044_v23  ;;  %v3997_v37 = vadd.f32 %v2868_v53, %v2010_v56  ;;  %v3004_v41 = vadd.f32 %v3994_v28, %v3003_v59  ;;  %v3829_v50 = vpop.f32.mrb[22].mxu1  ;;  %v3965_v20 = vpop.f32.mrb[22].mxu0 }
 0x21d   : > { %2969 = vst [vmem:[%s5539_s30 + $0xb0] sm:$0xff] %v3996_v61  ;;  %v3998_v0 = vadd.f32 %v3965_v20, %v3829_v50  ;;  %v2013_v22 = vpop.f32.mrb[23].mxu1  ;;  %v2871_v30 = vpop.f32.mrb[23].mxu0  ;;  %v3048_v36 = vmul.f32 %v3996_v61, %v3996_v61 }
 0x21e   : > { %2967 = vst [vmem:[%s5539_s30 + $0xa0] sm:$0xff] %v3997_v37  ;;  %v3005_v26 = vadd.f32 %v3997_v37, %v3004_v41  ;;  %v3046_v63 = vmul.f32 %v3997_v37, %v3997_v37  ;;  %v3076_v57 = vadd.f32 %v3075_v34, %v3045_v17  ;;  %v3999_v62 = vadd.f32 %v2871_v30, %v2013_v22 }
 0x21f   : > { %2970 = vst [vmem:[%s5539_s30 + $0xb8] sm:$0xff] %v3998_v0  ;;  %v3049_v4 = vmul.f32 %v3998_v0, %v3998_v0 }
 0x220   : > { %v3077_v5 = vadd.f32 %v3076_v57, %v3046_v63  ;;  %2968 = vst [vmem:[%s5539_s30 + $0xa8] sm:$0xff] %v3999_v62  ;;  %v3006_v49 = vadd.f32 %v3999_v62, %v3005_v26  ;;  %v3047_v54 = vmul.f32 %v3999_v62, %v3999_v62 }
 0x222   : > { %v3007_v45 = vadd.f32 %v3996_v61, %v3006_v49  ;;  %v3078_v31 = vadd.f32 %v3077_v5, %v3047_v54  ;;  %v3832_v29 = vpop.f32.mrb[24].mxu1  ;;  %v3968_v44 = vpop.f32.mrb[24].mxu0 }
 0x223   : > { %v4000_v16 = vadd.f32 %v3968_v44, %v3832_v29  ;;  %v2026_v52 = vpop.f32.mrb[25].mxu1  ;;  %v2884_v3 = vpop.f32.mrb[25].mxu0 }
 0x224   : > { %v3079_v11 = vadd.f32 %v3078_v31, %v3048_v36  ;;  %v4001_v21 = vadd.f32 %v2884_v3, %v2026_v52  ;;  %v3008_v13 = vadd.f32 %v3998_v0, %v3007_v45  ;;  %v3833_v24 = vpop.f32.mrb[26].mxu1  ;;  %v3969_v8 = vpop.f32.mrb[26].mxu0 }
 0x225   : > { %2973 = vst [vmem:[%s5539_s30 + $0xd0] sm:$0xff] %v4000_v16  ;;  %v4002_v9 = vadd.f32 %v3969_v8, %v3833_v24  ;;  %v2029_v10 = vpop.f32.mrb[27].mxu1  ;;  %v2887_v51 = vpop.f32.mrb[27].mxu0  ;;  %v3052_v27 = vmul.f32 %v4000_v16, %v4000_v16 }
 0x226   : > { %2971 = vst [vmem:[%s5539_s30 + $0xc0] sm:$0xff] %v4001_v21  ;;  %v3009_v1 = vadd.f32 %v4001_v21, %v3008_v13  ;;  %v3050_v33 = vmul.f32 %v4001_v21, %v4001_v21  ;;  %v3080_v39 = vadd.f32 %v3079_v11, %v3049_v4  ;;  %v4003_v58 = vadd.f32 %v2887_v51, %v2029_v10 }
 0x227   : > { %2974 = vst [vmem:[%s5539_s30 + $0xd8] sm:$0xff] %v4002_v9  ;;  %v3053_v38 = vmul.f32 %v4002_v9, %v4002_v9 }
 0x228   : > { %v3081_v40 = vadd.f32 %v3080_v39, %v3050_v33  ;;  %2972 = vst [vmem:[%s5539_s30 + $0xc8] sm:$0xff] %v4003_v58  ;;  %v3010_v42 = vadd.f32 %v4003_v58, %v3009_v1  ;;  %v3051_v15 = vmul.f32 %v4003_v58, %v4003_v58 }
 0x22a   : > { %v3011_v6 = vadd.f32 %v4000_v16, %v3010_v42  ;;  %v3082_v19 = vadd.f32 %v3081_v40, %v3051_v15  ;;  %v3836_v7 = vpop.f32.mrb[28].mxu1  ;;  %v3972_v60 = vpop.f32.mrb[28].mxu0 }
 0x22b   : > { %v4004_v14 = vadd.f32 %v3972_v60, %v3836_v7  ;;  %v2042_v28 = vpop.f32.mrb[29].mxu1  ;;  %v2900_v25 = vpop.f32.mrb[29].mxu0 }
 0x22c   : > { %v3083_v46 = vadd.f32 %v3082_v19, %v3052_v27  ;;  %v4005_v47 = vadd.f32 %v2900_v25, %v2042_v28  ;;  %v3012_v32 = vadd.f32 %v4002_v9, %v3011_v6  ;;  %v3837_v18 = vpop.f32.mrb[30].mxu1  ;;  %v3973_v43 = vpop.f32.mrb[30].mxu0 }
 0x22d   : > { %2977 = vst [vmem:[%s5539_s30 + $0xf0] sm:$0xff] %v4004_v14  ;;  %v4006_v55 = vadd.f32 %v3973_v43, %v3837_v18  ;;  %v2045_v12 = vpop.f32.mrb[31].mxu1  ;;  %v2903_v23 = vpop.f32.mrb[31].mxu0 }
 0x22e   : > { %2975 = vst [vmem:[%s5539_s30 + $0xe0] sm:$0xff] %v4005_v47  ;;  %v3013_v59 = vadd.f32 %v4005_v47, %v3012_v32  ;;  %v3054_v35 = vmul.f32 %v4005_v47, %v4005_v47  ;;  %v3084_v48 = vadd.f32 %v3083_v46, %v3053_v38  ;;  %v4007_v2 = vadd.f32 %v2903_v23, %v2045_v12 }
 0x22f   : > { %2978 = vst [vmem:[%s5539_s30 + $0xf8] sm:$0xff] %v4006_v55 }
 0x230   : > { %v3085_v61 = vadd.f32 %v3084_v48, %v3054_v35  ;;  %2976 = vst [vmem:[%s5539_s30 + $0xe8] sm:$0xff] %v4007_v2  ;;  %v3014_v56 = vadd.f32 %v4007_v2, %v3013_v59  ;;  %v3055_v53 = vmul.f32 %v4007_v2, %v4007_v2 }
 0x231   : > { %4346 = shalt.err (!%p4343_p5)
}
 0x232   : > { %s4347_s30 = scalar_lea.hbm %s5580_s9, 4096  ;;  %s4351_s8 = scalar_lea.hbm %s5709_s2, 8192 }
 0x233   : > { %p4348_p6 = scmp.ne.s32.totalorder %s5580_s9, %s4347_s30  ;;  %p4352_p10 = scmp.lt.u32.totalorder %s5580_s9, %s5709_s2 }
 0x234   : > { %p4353_p11 = scmp.lt.u32.totalorder %s4351_s8, %s4347_s30  ;;  %p4355_p13 = scmp.lt.u32.totalorder %s4347_s30, %s5580_s9 }
 0x235   : > { %p4349_p7 = pnand %p4348_p6, %p4546_p4 }
 0x236   : > { %p4354_p12 = por %p4353_p11, %p4352_p10 }
 0x237   : > { %p4350_p9 = pneg %p4349_p7 }
 0x238   : > { %p4356_p0 = por %p4355_p13, %p4354_p12 }
 0x23a   : > { %p4357_p1 = pnand %p4356_p0, %p4350_p9 }
 0x23c   : > { %4360 = shalt.err (!%p4357_p1)
}
 0x23d   : > { %s4475_s11 = smov 128   ;;  %s4476_s29 = smov 8   ;;  %v3056_v17 = vmul.f32 %v4004_v14, %v4004_v14  ;;  %v3015_v34 = vadd.f32 %v4004_v14, %v3014_v56  ;;  %v3086_v37 = vadd.f32 %v3085_v61, %v3055_v53  ;;  %v3057_v41 = vmul.f32 %v4006_v55, %v4006_v55  ;;  %v2985_v36 = vld [vmem:[%s5521_s24] sm:$0x1] }
 0x23e   : > { %4243 = dma.vmem_to_hbm [thread:$0]  (%p4546_p4), %s5582_s6, 4096, %s5580_s9, %s3098_s10, %s4475_s11, %s4475_s11, %s4476_s29  }
 0x23f   : > { %v3016_v50 = vadd.f32 %v4006_v55, %v3015_v34  ;;  %v3087_v20 = vadd.f32 %v3086_v37, %v3056_v17  ;;  %s5613_s14 = sand.u32 1, %s3276_s21   ;;  %s3510_s6 = sshll.u32 %s4463_s18, 4  ;;  %v3025_v29 = vld [vmem:[%s5525_s26] sm:$0x1] }
 0x240   : > { %s3138_s9 = sshll.u32 %s5521_s24, 4  ;;  %s3151_s10 = sshll.u32 %s5525_s26, 4  ;;  %s5625_s9 = int_to_ptr.vmem [resolvable:$true] %s3138_s9  ;;  %s5633_s10 = int_to_ptr.vmem [resolvable:$true] %s3151_s10 }
 0x241   : > { %v3017_v0 = vrot.slane %v3016_v50, 4  ;;  %v3088_v22 = vadd.f32 %v3087_v20, %v3057_v41  ;;  %s5623_s7 = scalar_lea.hbm %s5710_s3, %s3510_s6  ;;  %s5631_s8 = scalar_lea.hbm %s5711_s4, %s3510_s6 }
 0x242   : > { %s3103_s12 = scalar_lea.sflag [#allocation5], %s5613_s14  ;;  %s4361_s13 = scalar_lea.vmem %s5625_s9, 16 }
 0x243   : > { %v3018_v30 = vadd.f32 %v3017_v0, %v3016_v50  ;;  %v3089_v26 = vrot.slane %v3088_v22, 4  ;;  %p4362_p2 = scmp.ne.s32.totalorder %s5625_s9, %s4361_s13  ;;  %s4477_s11 = smov [#allocation4]  }
 0x244   : > { %s4365_s29 = sshll.u32 %s4477_s11, 4  ;;  %s4366_s29 = int_to_ptr.vmem [resolvable:$false] %s4365_s29 }
 0x245   : > { %v3019_v63 = vrot.slane %v3018_v30, 2  ;;  %v3090_v57 = vadd.f32 %v3089_v26, %v3088_v22  ;;  %p4363_p3 = pnand %p4362_p2, %p4546_p4  ;;  %s4367_s30 = scalar_lea.vmem %s4366_s29, 32 }
 0x246   : > { %p4368_p6 = scmp.lt.s32.totalorder %s5625_s9, %s4366_s29  ;;  %p4369_p7 = scmp.lt.s32.totalorder %s4367_s30, %s4361_s13 }
 0x247   : > { %v3091_v62 = vrot.slane %v3090_v57, 2  ;;  %v3020_v5 = vadd.f32 %v3019_v63, %v3018_v30  ;;  %p4364_p5 = pneg %p4363_p3 }
 0x248   : > { %p4370_p9 = por %p4369_p7, %p4368_p6 }
 0x249   : > { %v3021_v49 = vrot.slane %v3020_v5, 1  ;;  %v3092_v54 = vadd.f32 %v3091_v62, %v3090_v57 }
 0x24a   : > { %p4371_p10 = pnand %p4370_p9, %p4364_p5 }
 0x24b   : > { %v3022_v45 = vadd.f32 %v3021_v49, %v3020_v5  ;;  %v3093_v31 = vrot.slane %v3092_v54, 1 }
 0x24d   : > { %v3023_v44 = vadd.f32 %v3022_v45, %v2985_v36  ;;  %v3094_v16 = vadd.f32 %v3093_v31, %v3092_v54 }
 0x24f   : > { %3024 = vst [vmem:[%s5521_s24] sm:$0x1] %v3023_v44  ;;  %v3095_v52 = vadd.f32 %v3094_v16, %v3025_v29 }
 0x250   : > { %4374 = shalt.err (!%p4371_p10)
}
 0x251   : > { %s4375_s24 = scalar_lea.hbm %s5623_s7, 16  ;;  %s4379_s18 = scalar_lea.hbm %s5710_s3, 32 }
 0x252   : > { %p4376_p11 = scmp.ne.s32.totalorder %s5623_s7, %s4375_s24  ;;  %p4380_p0 = scmp.lt.u32.totalorder %s5623_s7, %s5710_s3 }
 0x253   : > { %p4381_p1 = scmp.lt.u32.totalorder %s4379_s18, %s4375_s24  ;;  %p4383_p3 = scmp.lt.u32.totalorder %s4375_s24, %s5623_s7 }
 0x254   : > { %p4377_p12 = pnand %p4376_p11, %p4546_p4 }
 0x255   : > { %p4382_p2 = por %p4381_p1, %p4380_p0 }
 0x256   : > { %p4378_p13 = pneg %p4377_p12 }
 0x257   : > { %p4384_p5 = por %p4383_p3, %p4382_p2 }
 0x259   : > { %p4385_p6 = pnand %p4384_p5, %p4378_p13 }
 0x25b   : > { %4388 = shalt.err (!%p4385_p6)
}
 0x25c   : > { %4244 = dma.vmem_to_hbm [thread:$0]  (%p4546_p4), %s5625_s9, 16, %s5623_s7, %s3103_s12   ;;  %3096 = vst [vmem:[%s5525_s26] sm:$0x1] %v3095_v52 }
 0x25d   : > { %s4389_s13 = scalar_lea.vmem %s5633_s10, 16  ;;  %s4478_s29 = smov [#allocation6]  }
 0x25e   : > { %p4390_p7 = scmp.ne.s32.totalorder %s5633_s10, %s4389_s13  ;;  %s4393_s30 = sshll.u32 %s4478_s29, 4  ;;  %s4394_s30 = int_to_ptr.vmem [resolvable:$false] %s4393_s30 }
 0x25f   : > { %s4395_s24 = scalar_lea.vmem %s4394_s30, 32  ;;  %p4396_p11 = scmp.lt.s32.totalorder %s5633_s10, %s4394_s30 }
 0x260   : > { %p4391_p9 = pnand %p4390_p7, %p4546_p4  ;;  %p4397_p12 = scmp.lt.s32.totalorder %s4395_s24, %s4389_s13 }
 0x262   : > { %p4392_p10 = pneg %p4391_p9  ;;  %p4398_p13 = por %p4397_p12, %p4396_p11 }
 0x264   : > { %p4399_p0 = pnand %p4398_p13, %p4392_p10 }
 0x266   : > { %4402 = shalt.err (!%p4399_p0)
}
 0x267   : > { %s4403_s26 = scalar_lea.hbm %s5631_s8, 16  ;;  %s4407_s6 = scalar_lea.hbm %s5711_s4, 32 }
 0x268   : > { %p4404_p1 = scmp.ne.s32.totalorder %s5631_s8, %s4403_s26  ;;  %p4408_p5 = scmp.lt.u32.totalorder %s5631_s8, %s5711_s4 }
 0x269   : > { %p4409_p6 = scmp.lt.u32.totalorder %s4407_s6, %s4403_s26  ;;  %p4411_p9 = scmp.lt.u32.totalorder %s4403_s26, %s5631_s8 }
 0x26a   : > { %p4405_p2 = pnand %p4404_p1, %p4546_p4 }
 0x26b   : > { %p4410_p7 = por %p4409_p6, %p4408_p5 }
 0x26c   : > { %p4406_p3 = pneg %p4405_p2 }
 0x26d   : > { %p4412_p10 = por %p4411_p9, %p4410_p7 }
 0x26f   : > { %p4413_p11 = pnand %p4412_p10, %p4406_p3 }
 0x271   : > { %4416 = shalt.err (!%p4413_p11)
}
 0x272   : > { %4245 = dma.vmem_to_hbm [thread:$0]  (%p4546_p4), %s5633_s10, 16, %s5631_s8, %s3103_s12  }
 0x273 PF: > { %p4259_p12 = scmp.ge.s32.totalorder %s4471_s20, 2  ;;  %s3163_s21 = sand.u32 1, %s4451_s15  }
 0x274   : > { %s3164_s11 = scalar_lea.sflag [#allocation3], %s3163_s21 }
 0x275   : > { %p4250_p13 = pnand %p4259_p12, %p4555_p8 }
 0x277   : > { %4442 = dma.done.wait (!%p4250_p13), %s3164_s11, 4096  }
 0x278   : > { %4444 = vsyncadd (!%p4250_p13), %s3164_s11, 4294963200  ;;  %s3172_s13 = sand.u32 1, %s3277_s22  }
 0x279   : > { %s3173_s25 = scalar_lea.sflag [#allocation5], %s3172_s13 }
 0x27a   : > { %4446 = dma.done.wait (!%p4250_p13), %s3173_s25, 32  }
 0x27b   : > { %4448 = vsyncadd (!%p4250_p13), %s3173_s25, 4294967264  ;;  %s21_s20 = sadd.s32 1, %s4471_s20   ;;  %s5791_s15 = smov %s4455_s16 }
 0x27c   : > { %p18_p4 = scmp.ge.s32.totalorder %s21_s20, 4   ;;  %s5792_s16 = smov %s4459_s17 }
 0x27d   : > { %s5793_s17 = smov %s4561_s28  ;;  %s5794_s18 = smov %s4467_s19 }
 0x27e   : > { %s5795_s19 = smov %s5797_s23  ;;  %20 = sbr.rel (!%p18_p4) target bundleno = 6 (0x6), region = 108 }
 0x285   :  { %3185 = vsyncpa [#allocation3], 1 }
 0x286   :  { %3187 = vsyncpa [#allocation3 + $0x1], 1 }
 0x287   :  { %3188 = vsyncpa [#allocation5], 1 }
 0x288   :  { %3190 = vsyncpa [#allocation5 + $0x1], 1 }

</bundles_post_ra>
